<compile_context>
chip_gen: v5e
topology: v5e:2x2
jax: 0.10.0
libtpu: 0.0.40
codegen_flags: <defaults>
</compile_context>

<pallas_src>
import functools

import jax
import jax.numpy as jnp
from jax import lax
from jax.experimental import pallas as pl
from jax.experimental.pallas import tpu as pltpu

# ----------------------------------------------------------------------------
# "run_opts" equivalents (synthetic, small)
# ----------------------------------------------------------------------------
MAX_DISP = 32
MATCHING_SCALE = 1
MULTISCALE = 0
SCALE_FACTOR = 2 ** (MATCHING_SCALE + 1)          # 4
NUM_BINS = MAX_DISP // SCALE_FACTOR               # 8 disparity hypotheses
DOT_DIM = 16                                      # dot-product normalisation
MATCH_DIM = 16                                    # MATCHING_FEATURE_DIMS
ENC_DIM = 24                                      # num_ch_enc[MATCHING_SCALE]
EMB_DIM = MATCH_DIM + ENC_DIM                     # fused embedding width (40)
DEC_HIDDEN = 32


# ----------------------------------------------------------------------------
# Fused kernel: encoder -> cost volume -> softmax stats -> filtered decoder
# Block layout: channels on sublanes, pixels (flattened h*W + w) on lanes.
# ----------------------------------------------------------------------------
def _iinet_fused_kernel(lp_ref, rp_ref,               # bf16 patch inputs
                        wE_ref, bE_ref,               # fused embedding weights
                        w1cv_ref, w1f_ref, b1_ref,    # decoder layer 1
                        w2_ref, b2_ref,               # decoder layer 2
                        cv_ref, conf_ref, cdisp_ref, disp_ref,
                        *, num_bins, match_dim, inv_dot_dim,
                        disp_scale, row_width):
    lp = lp_ref[0]                                   # [Kin, tp]  bf16
    rp = rp_ref[0]                                   # [Kin, tp]  bf16
    wE = wE_ref[...]                                 # [40, Kin]  bf16
    bE = bE_ref[...]                                 # [40, 1]    f32

    # --- patch-embedding encoder (strided conv as matmul) + relu -------------
    # Left image: matching + context features come from ONE fused matmul.
    feat_l = jnp.dot(wE, lp, preferred_element_type=jnp.float32) + bE
    feat_l = jnp.maximum(feat_l, 0.0)                # [40, tp]
    match_l = feat_l[:match_dim, :]                  # [16, tp]
    enc_l = feat_l[match_dim:, :]                    # [24, tp]
    # Right image: only the matching head is needed.
    match_r = (jnp.dot(wE[:match_dim, :], rp, preferred_element_type=jnp.float32)
               + bE[:match_dim, :])
    match_r = jnp.maximum(match_r, 0.0)              # [16, tp]

    tp = match_l.shape[1]
    # lane position within an image row, for masking out-of-frame disparities
    w_in_row = lax.broadcasted_iota(jnp.int32, (1, tp), 1) % row_width

    # --- cost volume: per-pixel correlation over disparity hypotheses --------
    # TODO(synk): MsCostVolumeManager source unavailable; out-of-frame
    # disparities (w < d) are zeroed, matching the zero-padding assumption.
    cv_rows = []
    for d in range(num_bins):
        r_sh = match_r if d == 0 else pltpu.roll(match_r, shift=d, axis=1)
        corr = jnp.sum(match_l * r_sh, axis=0, keepdims=True) * inv_dot_dim
        if d > 0:
            corr = jnp.where(w_in_row >= d, corr, 0.0)
        cv_rows.append(corr)
    cv = jnp.concatenate(cv_rows, axis=0)            # [D, tp]

    # --- softmax statistics: confidence + soft-argmax coarse disparity -------
    m = jnp.max(cv, axis=0, keepdims=True)
    e = jnp.exp(cv - m)
    denom = jnp.sum(e, axis=0, keepdims=True)
    conf = pl.reciprocal(denom, approx=True)         # == max_d softmax(cv), exactly
    bins = (lax.broadcasted_iota(jnp.int32, (num_bins, 1), 0)
            .astype(jnp.float32) * disp_scale)
    cdisp = jnp.sum(e * bins, axis=0, keepdims=True) * conf   # [1, tp]

    # --- confidence-filtered volume + fused decoder head (1x1 convs) ---------
    filt = cv * conf                                 # [D, tp]
    h = (jnp.dot(w1cv_ref[...], filt, preferred_element_type=jnp.float32)
         + jnp.dot(w1f_ref[...], enc_l, preferred_element_type=jnp.float32)
         + b1_ref[...])
    h = jnp.maximum(h, 0.0)                          # [Hd, tp]
    # final [Hd] -> 1 projection as a VPU multiply + sublane reduce (no 1-lane MXU)
    disp_pred = jnp.sum(h * w2_ref[...], axis=0, keepdims=True) + b2_ref[...]

    cv_ref[0] = cv
    conf_ref[0] = conf
    cdisp_ref[0] = cdisp
    disp_ref[0] = disp_pred


# ----------------------------------------------------------------------------
# Glue (plain JAX): patch extraction, tiling choice, parameter init, forward
# ----------------------------------------------------------------------------
def extract_patches_cf(img_nchw, s):
    """NCHW -> channels-first patches [B, C*s*s, (H/s)*(W/s)] (stride-s conv im2col)."""
    B, C, H, W = img_nchw.shape
    Hs, Ws = H // s, W // s
    x = img_nchw.reshape(B, C, Hs, s, Ws, s)
    x = x.transpose(0, 1, 3, 5, 2, 4)                # B, C, sy, sx, Hs, Ws
    return x.reshape(B, C * s * s, Hs * Ws)


def _choose_tile_pixels(P, Ws, max_pixels=2048):
    """Largest pixel-tile that divides P, is a multiple of Ws (so disparity rolls
    stay inside the tile) and preferably a multiple of 128 (lane-dense)."""
    candidates = [t for t in range(Ws, P + 1, Ws) if P % t == 0 and t <= max_pixels]
    if not candidates:
        return P
    lane_dense = [t for t in candidates if t % 128 == 0]
    return max(lane_dense) if lane_dense else max(candidates)


def init_params(key):
    kin = 3 * SCALE_FACTOR * SCALE_FACTOR            # 48
    ks = jax.random.split(key, 4)

    def w(k, shape, scale=0.05):
        return jax.random.normal(k, shape, jnp.float32) * scale

    return {
        # TODO(synk): ResnetMatchingEncoder / UnetMatchingEncoder replaced by a
        # single fused strided patch-embedding (matching + context heads share
        # one weight slab, rows [0:16] matching, rows [16:40] context).
        "w_embed_t": w(ks[0], (EMB_DIM, kin)),       # [40, 48]
        "b_embed": jnp.zeros((EMB_DIM, 1), jnp.float32),
        # TODO(synk): CVEncoder + DepthDecoderMSR (UNet++) replaced by a fused
        # two-layer 1x1-conv head on the confidence-filtered volume.
        "w1_cv_t": w(ks[1], (DEC_HIDDEN, NUM_BINS)),     # [32, 8]
        "w1_feat_t": w(ks[2], (DEC_HIDDEN, ENC_DIM)),    # [32, 24]
        "b1": jnp.zeros((DEC_HIDDEN, 1), jnp.float32),
        "w2_col": w(ks[3], (DEC_HIDDEN, 1)),             # [32, 1]
        "b2": jnp.zeros((1, 1), jnp.float32),
    }


def iinet_forward(params, left_image, right_image):
    assert left_image.shape[2] % 32 == 0 and right_image.shape[2] % 32 == 0, \
        "Image size must be divisible by 32!"
    B, _, H, W = left_image.shape
    s = SCALE_FACTOR
    Hs, Ws = H // s, W // s
    P = Hs * Ws
    kin = 3 * s * s
    nb = NUM_BINS

    # bf16 storage halves HBM traffic; MXU accumulates in f32 inside the kernel.
    left_p = extract_patches_cf(left_image, s).astype(jnp.bfloat16)
    right_p = extract_patches_cf(right_image, s).astype(jnp.bfloat16)

    tp = _choose_tile_pixels(P, Ws)
    grid = (B, P // tp)

    kernel = functools.partial(
        _iinet_fused_kernel,
        num_bins=nb, match_dim=MATCH_DIM,
        inv_dot_dim=1.0 / float(DOT_DIM),
        disp_scale=float(s), row_width=Ws)

    out_shapes = (
        jax.ShapeDtypeStruct((B, nb, P), jnp.float32),   # cost volume
        jax.ShapeDtypeStruct((B, 1, P), jnp.float32),    # confidence
        jax.ShapeDtypeStruct((B, 1, P), jnp.float32),    # coarse disparity
        jax.ShapeDtypeStruct((B, 1, P), jnp.float32),    # decoder disparity
    )

    cv, conf, cdisp, disp_pred = pl.pallas_call(
        kernel,
        out_shape=out_shapes,
        grid_spec=pltpu.PrefetchScalarGridSpec(
            num_scalar_prefetch=0,
            grid=grid,
            in_specs=[
                pl.BlockSpec((1, kin, tp), lambda b, t: (b, 0, t)),
                pl.BlockSpec((1, kin, tp), lambda b, t: (b, 0, t)),
                pl.BlockSpec((EMB_DIM, kin), lambda b, t: (0, 0)),
                pl.BlockSpec((EMB_DIM, 1), lambda b, t: (0, 0)),
                pl.BlockSpec((DEC_HIDDEN, nb), lambda b, t: (0, 0)),
                pl.BlockSpec((DEC_HIDDEN, ENC_DIM), lambda b, t: (0, 0)),
                pl.BlockSpec((DEC_HIDDEN, 1), lambda b, t: (0, 0)),
                pl.BlockSpec((DEC_HIDDEN, 1), lambda b, t: (0, 0)),
                pl.BlockSpec((1, 1), lambda b, t: (0, 0)),
            ],
            out_specs=(
                pl.BlockSpec((1, nb, tp), lambda b, t: (b, 0, t)),
                pl.BlockSpec((1, 1, tp), lambda b, t: (b, 0, t)),
                pl.BlockSpec((1, 1, tp), lambda b, t: (b, 0, t)),
                pl.BlockSpec((1, 1, tp), lambda b, t: (b, 0, t)),
            ),
        ),
        compiler_params=pltpu.CompilerParams(
            dimension_semantics=("parallel", "parallel")),
    )(left_p, right_p,
      params["w_embed_t"].astype(jnp.bfloat16), params["b_embed"],
      params["w1_cv_t"], params["w1_feat_t"], params["b1"],
      params["w2_col"], params["b2"])

    # Kernel already emits flattened-NCHW; these reshapes are free (no transpose).
    cv_nchw = cv.reshape(B, nb, Hs, Ws)
    conf_nchw = conf.reshape(B, 1, Hs, Ws)
    cdisp_nchw = cdisp.reshape(B, 1, Hs, Ws)
    disp_nchw = disp_pred.reshape(B, 1, Hs, Ws)

    bin_vals = jnp.arange(nb, dtype=jnp.float32) * float(s)
    hypos = jnp.broadcast_to(bin_vals.reshape(1, nb, 1, 1), (B, nb, Hs, Ws))

    return {
        f"disp_pred_s{MATCHING_SCALE + 1}": disp_nchw,   # decoder output
        "coarse_disp": cdisp_nchw,                       # priority['cdisp'][0]
        "cost_volume": [cv_nchw],                        # list, as in torch code
        "hypos": [hypos],
        "confidence": conf_nchw[0:1],                    # priority['cconf'][0][0:1]
    }


# ----------------------------------------------------------------------------
# Pure-JAX reference (same math, same bf16 input rounding) for validation
# ----------------------------------------------------------------------------
def _reference_forward(params, left_image, right_image):
    s = SCALE_FACTOR
    B, _, H, W = left_image.shape
    Hs, Ws = H // s, W // s
    lp = extract_patches_cf(left_image, s).astype(jnp.bfloat16).astype(jnp.float32)
    rp = extract_patches_cf(right_image, s).astype(jnp.bfloat16).astype(jnp.float32)
    wE = params["w_embed_t"].astype(jnp.bfloat16).astype(jnp.float32)

    feat_l = jnp.maximum(jnp.einsum("ok,bkp->bop", wE, lp)
                         + params["b_embed"][None], 0.0)
    match_l = feat_l[:, :MATCH_DIM].reshape(B, MATCH_DIM, Hs, Ws)
    enc_l = feat_l[:, MATCH_DIM:].reshape(B, ENC_DIM, Hs, Ws)
    match_r = jnp.maximum(jnp.einsum("ok,bkp->bop", wE[:MATCH_DIM], rp)
                          + params["b_embed"][None, :MATCH_DIM], 0.0)
    match_r = match_r.reshape(B, MATCH_DIM, Hs, Ws)

    cvs = []
    for d in range(NUM_BINS):
        if d == 0:
            r_sh = match_r
        else:
            r_sh = jnp.concatenate(
                [jnp.zeros_like(match_r[..., :d]), match_r[..., :Ws - d]], axis=-1)
        cvs.append(jnp.sum(match_l * r_sh, axis=1) / float(DOT_DIM))
    cv = jnp.stack(cvs, axis=1)                          # [B, D, Hs, Ws]

    m = jnp.max(cv, axis=1, keepdims=True)
    e = jnp.exp(cv - m)
    denom = jnp.sum(e, axis=1, keepdims=True)
    conf = 1.0 / denom
    bins = (jnp.arange(NUM_BINS, dtype=jnp.float32) * s).reshape(1, NUM_BINS, 1, 1)
    cdisp = jnp.sum(e * bins, axis=1, keepdims=True) * conf

    filt = cv * conf
    h = (jnp.einsum("od,bdhw->bohw", params["w1_cv_t"], filt)
         + jnp.einsum("oc,bchw->bohw", params["w1_feat_t"], enc_l)
         + params["b1"].reshape(1, DEC_HIDDEN, 1, 1))
    h = jnp.maximum(h, 0.0)
    disp = (jnp.sum(h * params["w2_col"].reshape(1, DEC_HIDDEN, 1, 1),
                    axis=1, keepdims=True)
            + params["b2"].reshape(1, 1, 1, 1))
    return cv, conf, cdisp, disp


if __name__ == "__main__":
    key = jax.random.PRNGKey(0)
    k_left, k_right, k_params = jax.random.split(key, 3)

    # small, 32-divisible stereo pair: B=2, C=3, H=W=64  ->  16x16 feature grid
    left = jax.random.normal(k_left, (2, 3, 64, 64), jnp.float32)
    right = jax.random.normal(k_right, (2, 3, 64, 64), jnp.float32)
    params = init_params(k_params)

    out = jax.jit(iinet_forward)(params, left, right)
    jax.block_until_ready(out)

    # shape / finiteness checks (as in the torch module outputs)
    assert out["coarse_disp"].shape == (2, 1, 16, 16)
    assert out["cost_volume"][0].shape == (2, NUM_BINS, 16, 16)
    assert out["hypos"][0].shape == (2, NUM_BINS, 16, 16)
    assert out["confidence"].shape == (1, 1, 16, 16)
    assert out[f"disp_pred_s{MATCHING_SCALE + 1}"].shape == (2, 1, 16, 16)
    assert bool(jnp.all(jnp.isfinite(out["coarse_disp"])))
    assert bool(jnp.all(jnp.isfinite(out[f"disp_pred_s{MATCHING_SCALE + 1}"])))

    # numerical check vs pure-JAX reference (approx reciprocal => loose tol)
    cv_r, conf_r, cdisp_r, disp_r = _reference_forward(params, left, right)
    assert bool(jnp.allclose(out["cost_volume"][0], cv_r, rtol=1e-2, atol=1e-2))
    assert bool(jnp.allclose(out["confidence"], conf_r[0:1], rtol=1e-2, atol=1e-2))
    assert bool(jnp.allclose(out["coarse_disp"], cdisp_r, rtol=1e-2, atol=1e-2))
    assert bool(jnp.allclose(out[f"disp_pred_s{MATCHING_SCALE + 1}"], disp_r,
                             rtol=1e-2, atol=1e-2))
    print("KERNEL_OK")
</pallas_src>

<mosaic_0001>
module attributes {stable_mosaic.version = 11 : i64} {
  func.func @_iinet_fused_kernel(%arg0: i32, %arg1: i32, %arg2: memref<1x48x256xbf16, #tpu.memory_space<vmem>>, %arg3: memref<1x48x256xbf16, #tpu.memory_space<vmem>>, %arg4: memref<40x48xbf16, #tpu.memory_space<vmem>>, %arg5: memref<40x1xf32, #tpu.memory_space<vmem>>, %arg6: memref<32x8xf32, #tpu.memory_space<vmem>>, %arg7: memref<32x24xf32, #tpu.memory_space<vmem>>, %arg8: memref<32x1xf32, #tpu.memory_space<vmem>>, %arg9: memref<32x1xf32, #tpu.memory_space<vmem>>, %arg10: memref<1x1xf32, #tpu.memory_space<vmem>>, %arg11: memref<1x8x256xf32, #tpu.memory_space<vmem>>, %arg12: memref<1x1x256xf32, #tpu.memory_space<vmem>>, %arg13: memref<1x1x256xf32, #tpu.memory_space<vmem>>, %arg14: memref<1x1x256xf32, #tpu.memory_space<vmem>>) attributes {dimension_semantics = [#tpu.dimension_semantics<parallel>, #tpu.dimension_semantics<parallel>], iteration_bounds = array<i64: 2, 1>, scalar_prefetch = 0 : i64, scratch_operands = 0 : i64, tpu.core_type = #tpu.core_type<tc>, window_params = [{transform_indices = @transform_0, window_bounds = array<i64: 1, 48, 256>}, {transform_indices = @transform_1, window_bounds = array<i64: 1, 48, 256>}, {pipeline_mode = #tpu.pipeline_mode<synchronous>, transform_indices = @transform_2, window_bounds = array<i64: 40, 48>}, {pipeline_mode = #tpu.pipeline_mode<synchronous>, transform_indices = @transform_3, window_bounds = array<i64: 40, 1>}, {pipeline_mode = #tpu.pipeline_mode<synchronous>, transform_indices = @transform_4, window_bounds = array<i64: 32, 8>}, {pipeline_mode = #tpu.pipeline_mode<synchronous>, transform_indices = @transform_5, window_bounds = array<i64: 32, 24>}, {pipeline_mode = #tpu.pipeline_mode<synchronous>, transform_indices = @transform_6, window_bounds = array<i64: 32, 1>}, {pipeline_mode = #tpu.pipeline_mode<synchronous>, transform_indices = @transform_7, window_bounds = array<i64: 32, 1>}, {pipeline_mode = #tpu.pipeline_mode<synchronous>, transform_indices = @transform_8, window_bounds = array<i64: 1, 1>}, {transform_indices = @transform_9, window_bounds = array<i64: 1, 8, 256>}, {transform_indices = @transform_10, window_bounds = array<i64: 1, 1, 256>}, {transform_indices = @transform_11, window_bounds = array<i64: 1, 1, 256>}, {transform_indices = @transform_12, window_bounds = array<i64: 1, 1, 256>}]} {
    %c0 = arith.constant 0 : index
    %c0_0 = arith.constant 0 : index
    %c0_1 = arith.constant 0 : index
    %0 = vector.load %arg2[%c0, %c0_0, %c0_1] : memref<1x48x256xbf16, #tpu.memory_space<vmem>>, vector<1x48x256xbf16>
    %1 = vector.shape_cast %0 : vector<1x48x256xbf16> to vector<48x256xbf16>
    %c0_2 = arith.constant 0 : index
    %c0_3 = arith.constant 0 : index
    %c0_4 = arith.constant 0 : index
    %2 = vector.load %arg3[%c0_2, %c0_3, %c0_4] : memref<1x48x256xbf16, #tpu.memory_space<vmem>>, vector<1x48x256xbf16>
    %3 = vector.shape_cast %2 : vector<1x48x256xbf16> to vector<48x256xbf16>
    %c0_5 = arith.constant 0 : index
    %c0_6 = arith.constant 0 : index
    %4 = vector.load %arg4[%c0_5, %c0_6] : memref<40x48xbf16, #tpu.memory_space<vmem>>, vector<40x48xbf16>
    %c0_7 = arith.constant 0 : index
    %c0_8 = arith.constant 0 : index
    %5 = vector.load %arg5[%c0_7, %c0_8] : memref<40x1xf32, #tpu.memory_space<vmem>>, vector<40x1xf32>
    %cst = arith.constant dense<0.000000e+00> : vector<40x256xf32>
    %6 = tpu.matmul %4, %1, %cst {dimension_numbers = #tpu.dot_dimension_numbers<[1], [0], [0], [1], [0, 0, 1, 1], [], []>} : vector<40x48xbf16>, vector<48x256xbf16>, vector<40x256xf32> -> vector<40x256xf32>
    %7 = vector.broadcast %5 : vector<40x1xf32> to vector<40x256xf32>
    %8 = arith.addf %6, %7 : vector<40x256xf32>
    %cst_9 = arith.constant 0.000000e+00 : f32
    %9 = vector.broadcast %cst_9 : f32 to vector<40x256xf32>
    %10 = arith.maximumf %8, %9 : vector<40x256xf32>
    %11 = vector.extract_strided_slice %10 {offsets = [0, 0], sizes = [16, 256], strides = [1, 1]} : vector<40x256xf32> to vector<16x256xf32>
    %12 = vector.extract_strided_slice %10 {offsets = [16, 0], sizes = [24, 256], strides = [1, 1]} : vector<40x256xf32> to vector<24x256xf32>
    %13 = vector.extract_strided_slice %4 {offsets = [0, 0], sizes = [16, 48], strides = [1, 1]} : vector<40x48xbf16> to vector<16x48xbf16>
    %cst_10 = arith.constant dense<0.000000e+00> : vector<16x256xf32>
    %14 = tpu.matmul %13, %3, %cst_10 {dimension_numbers = #tpu.dot_dimension_numbers<[1], [0], [0], [1], [0, 0, 1, 1], [], []>} : vector<16x48xbf16>, vector<48x256xbf16>, vector<16x256xf32> -> vector<16x256xf32>
    %15 = vector.extract_strided_slice %5 {offsets = [0, 0], sizes = [16, 1], strides = [1, 1]} : vector<40x1xf32> to vector<16x1xf32>
    %16 = vector.broadcast %15 : vector<16x1xf32> to vector<16x256xf32>
    %17 = arith.addf %14, %16 : vector<16x256xf32>
    %cst_11 = arith.constant 0.000000e+00 : f32
    %18 = vector.broadcast %cst_11 : f32 to vector<16x256xf32>
    %19 = arith.maximumf %17, %18 : vector<16x256xf32>
    %20 = tpu.iota {dimensions = array<i32: 1>} : vector<1x256xi32>
    %c16_i32 = arith.constant 16 : i32
    %c0_i32 = arith.constant 0 : i32
    %21 = arith.cmpi eq, %c16_i32, %c0_i32 : i32
    %c1_i32 = arith.constant 1 : i32
    %22 = arith.select %21, %c1_i32, %c16_i32 : i32
    %23 = vector.broadcast %22 : i32 to vector<1x256xi32>
    %24 = arith.remsi %20, %23 : vector<1x256xi32>
    %c0_i32_12 = arith.constant 0 : i32
    %25 = vector.broadcast %c0_i32_12 : i32 to vector<1x256xi32>
    %26 = arith.cmpi ne, %24, %25 : vector<1x256xi32>
    %c0_i32_13 = arith.constant 0 : i32
    %27 = vector.broadcast %c0_i32_13 : i32 to vector<1x256xi32>
    %28 = arith.cmpi slt, %24, %27 : vector<1x256xi32>
    %c0_i32_14 = arith.constant 0 : i32
    %29 = arith.cmpi slt, %22, %c0_i32_14 : i32
    %30 = vector.broadcast %29 : i1 to vector<1x256xi1>
    %31 = vector.broadcast %30 : vector<1x256xi1> to vector<1x256xi1>
    %32 = arith.xori %28, %31 : vector<1x256xi1>
    %33 = arith.andi %32, %26 : vector<1x256xi1>
    %34 = vector.broadcast %22 : i32 to vector<1x256xi32>
    %35 = arith.addi %24, %34 : vector<1x256xi32>
    %36 = arith.select %33, %35, %24 : vector<1x256xi1>, vector<1x256xi32>
    %37 = arith.mulf %11, %19 : vector<16x256xf32>
    %cst_15 = arith.constant dense<0.000000e+00> : vector<256xf32>
    %38 = vector.multi_reduction <add>, %37, %cst_15 [0] : vector<16x256xf32> to vector<256xf32>
    %39 = vector.shape_cast %38 : vector<256xf32> to vector<1x256xf32>
    %cst_16 = arith.constant 6.250000e-02 : f32
    %40 = vector.broadcast %cst_16 : f32 to vector<1x256xf32>
    %41 = arith.mulf %39, %40 : vector<1x256xf32>
    %c1_i32_17 = arith.constant 1 : i32
    %42 = tpu.dynamic_rotate %19 by %c1_i32_17 dim 1 : vector<16x256xf32>, i32 -> vector<16x256xf32>
    %43 = arith.mulf %11, %42 : vector<16x256xf32>
    %cst_18 = arith.constant dense<0.000000e+00> : vector<256xf32>
    %44 = vector.multi_reduction <add>, %43, %cst_18 [0] : vector<16x256xf32> to vector<256xf32>
    %45 = vector.shape_cast %44 : vector<256xf32> to vector<1x256xf32>
    %cst_19 = arith.constant 6.250000e-02 : f32
    %46 = vector.broadcast %cst_19 : f32 to vector<1x256xf32>
    %47 = arith.mulf %45, %46 : vector<1x256xf32>
    %c1_i32_20 = arith.constant 1 : i32
    %48 = vector.broadcast %c1_i32_20 : i32 to vector<1x256xi32>
    %49 = arith.cmpi sge, %36, %48 : vector<1x256xi32>
    %cst_21 = arith.constant 0.000000e+00 : f32
    %50 = vector.broadcast %cst_21 : f32 to vector<1x256xf32>
    %51 = arith.select %49, %47, %50 : vector<1x256xi1>, vector<1x256xf32>
    %c2_i32 = arith.constant 2 : i32
    %52 = tpu.dynamic_rotate %19 by %c2_i32 dim 1 : vector<16x256xf32>, i32 -> vector<16x256xf32>
    %53 = arith.mulf %11, %52 : vector<16x256xf32>
    %cst_22 = arith.constant dense<0.000000e+00> : vector<256xf32>
    %54 = vector.multi_reduction <add>, %53, %cst_22 [0] : vector<16x256xf32> to vector<256xf32>
    %55 = vector.shape_cast %54 : vector<256xf32> to vector<1x256xf32>
    %cst_23 = arith.constant 6.250000e-02 : f32
    %56 = vector.broadcast %cst_23 : f32 to vector<1x256xf32>
    %57 = arith.mulf %55, %56 : vector<1x256xf32>
    %c2_i32_24 = arith.constant 2 : i32
    %58 = vector.broadcast %c2_i32_24 : i32 to vector<1x256xi32>
    %59 = arith.cmpi sge, %36, %58 : vector<1x256xi32>
    %cst_25 = arith.constant 0.000000e+00 : f32
    %60 = vector.broadcast %cst_25 : f32 to vector<1x256xf32>
    %61 = arith.select %59, %57, %60 : vector<1x256xi1>, vector<1x256xf32>
    %c3_i32 = arith.constant 3 : i32
    %62 = tpu.dynamic_rotate %19 by %c3_i32 dim 1 : vector<16x256xf32>, i32 -> vector<16x256xf32>
    %63 = arith.mulf %11, %62 : vector<16x256xf32>
    %cst_26 = arith.constant dense<0.000000e+00> : vector<256xf32>
    %64 = vector.multi_reduction <add>, %63, %cst_26 [0] : vector<16x256xf32> to vector<256xf32>
    %65 = vector.shape_cast %64 : vector<256xf32> to vector<1x256xf32>
    %cst_27 = arith.constant 6.250000e-02 : f32
    %66 = vector.broadcast %cst_27 : f32 to vector<1x256xf32>
    %67 = arith.mulf %65, %66 : vector<1x256xf32>
    %c3_i32_28 = arith.constant 3 : i32
    %68 = vector.broadcast %c3_i32_28 : i32 to vector<1x256xi32>
    %69 = arith.cmpi sge, %36, %68 : vector<1x256xi32>
    %cst_29 = arith.constant 0.000000e+00 : f32
    %70 = vector.broadcast %cst_29 : f32 to vector<1x256xf32>
    %71 = arith.select %69, %67, %70 : vector<1x256xi1>, vector<1x256xf32>
    %c4_i32 = arith.constant 4 : i32
    %72 = tpu.dynamic_rotate %19 by %c4_i32 dim 1 : vector<16x256xf32>, i32 -> vector<16x256xf32>
    %73 = arith.mulf %11, %72 : vector<16x256xf32>
    %cst_30 = arith.constant dense<0.000000e+00> : vector<256xf32>
    %74 = vector.multi_reduction <add>, %73, %cst_30 [0] : vector<16x256xf32> to vector<256xf32>
    %75 = vector.shape_cast %74 : vector<256xf32> to vector<1x256xf32>
    %cst_31 = arith.constant 6.250000e-02 : f32
    %76 = vector.broadcast %cst_31 : f32 to vector<1x256xf32>
    %77 = arith.mulf %75, %76 : vector<1x256xf32>
    %c4_i32_32 = arith.constant 4 : i32
    %78 = vector.broadcast %c4_i32_32 : i32 to vector<1x256xi32>
    %79 = arith.cmpi sge, %36, %78 : vector<1x256xi32>
    %cst_33 = arith.constant 0.000000e+00 : f32
    %80 = vector.broadcast %cst_33 : f32 to vector<1x256xf32>
    %81 = arith.select %79, %77, %80 : vector<1x256xi1>, vector<1x256xf32>
    %c5_i32 = arith.constant 5 : i32
    %82 = tpu.dynamic_rotate %19 by %c5_i32 dim 1 : vector<16x256xf32>, i32 -> vector<16x256xf32>
    %83 = arith.mulf %11, %82 : vector<16x256xf32>
    %cst_34 = arith.constant dense<0.000000e+00> : vector<256xf32>
    %84 = vector.multi_reduction <add>, %83, %cst_34 [0] : vector<16x256xf32> to vector<256xf32>
    %85 = vector.shape_cast %84 : vector<256xf32> to vector<1x256xf32>
    %cst_35 = arith.constant 6.250000e-02 : f32
    %86 = vector.broadcast %cst_35 : f32 to vector<1x256xf32>
    %87 = arith.mulf %85, %86 : vector<1x256xf32>
    %c5_i32_36 = arith.constant 5 : i32
    %88 = vector.broadcast %c5_i32_36 : i32 to vector<1x256xi32>
    %89 = arith.cmpi sge, %36, %88 : vector<1x256xi32>
    %cst_37 = arith.constant 0.000000e+00 : f32
    %90 = vector.broadcast %cst_37 : f32 to vector<1x256xf32>
    %91 = arith.select %89, %87, %90 : vector<1x256xi1>, vector<1x256xf32>
    %c6_i32 = arith.constant 6 : i32
    %92 = tpu.dynamic_rotate %19 by %c6_i32 dim 1 : vector<16x256xf32>, i32 -> vector<16x256xf32>
    %93 = arith.mulf %11, %92 : vector<16x256xf32>
    %cst_38 = arith.constant dense<0.000000e+00> : vector<256xf32>
    %94 = vector.multi_reduction <add>, %93, %cst_38 [0] : vector<16x256xf32> to vector<256xf32>
    %95 = vector.shape_cast %94 : vector<256xf32> to vector<1x256xf32>
    %cst_39 = arith.constant 6.250000e-02 : f32
    %96 = vector.broadcast %cst_39 : f32 to vector<1x256xf32>
    %97 = arith.mulf %95, %96 : vector<1x256xf32>
    %c6_i32_40 = arith.constant 6 : i32
    %98 = vector.broadcast %c6_i32_40 : i32 to vector<1x256xi32>
    %99 = arith.cmpi sge, %36, %98 : vector<1x256xi32>
    %cst_41 = arith.constant 0.000000e+00 : f32
    %100 = vector.broadcast %cst_41 : f32 to vector<1x256xf32>
    %101 = arith.select %99, %97, %100 : vector<1x256xi1>, vector<1x256xf32>
    %c7_i32 = arith.constant 7 : i32
    %102 = tpu.dynamic_rotate %19 by %c7_i32 dim 1 : vector<16x256xf32>, i32 -> vector<16x256xf32>
    %103 = arith.mulf %11, %102 : vector<16x256xf32>
    %cst_42 = arith.constant dense<0.000000e+00> : vector<256xf32>
    %104 = vector.multi_reduction <add>, %103, %cst_42 [0] : vector<16x256xf32> to vector<256xf32>
    %105 = vector.shape_cast %104 : vector<256xf32> to vector<1x256xf32>
    %cst_43 = arith.constant 6.250000e-02 : f32
    %106 = vector.broadcast %cst_43 : f32 to vector<1x256xf32>
    %107 = arith.mulf %105, %106 : vector<1x256xf32>
    %c7_i32_44 = arith.constant 7 : i32
    %108 = vector.broadcast %c7_i32_44 : i32 to vector<1x256xi32>
    %109 = arith.cmpi sge, %36, %108 : vector<1x256xi32>
    %cst_45 = arith.constant 0.000000e+00 : f32
    %110 = vector.broadcast %cst_45 : f32 to vector<1x256xf32>
    %111 = arith.select %109, %107, %110 : vector<1x256xi1>, vector<1x256xf32>
    %112 = tpu.concatenate %41, %51, %61, %71, %81, %91, %101, %111 in 0 : vector<1x256xf32>, vector<1x256xf32>, vector<1x256xf32>, vector<1x256xf32>, vector<1x256xf32>, vector<1x256xf32>, vector<1x256xf32>, vector<1x256xf32> -> vector<8x256xf32>
    %cst_46 = arith.constant dense<0xFF800000> : vector<256xf32>
    %113 = vector.multi_reduction <maximumf>, %112, %cst_46 [0] : vector<8x256xf32> to vector<256xf32>
    %114 = vector.shape_cast %113 : vector<256xf32> to vector<1x256xf32>
    %115 = vector.broadcast %114 : vector<1x256xf32> to vector<8x256xf32>
    %116 = arith.subf %112, %115 : vector<8x256xf32>
    %117 = math.exp %116 : vector<8x256xf32>
    %cst_47 = arith.constant dense<0.000000e+00> : vector<256xf32>
    %118 = vector.multi_reduction <add>, %117, %cst_47 [0] : vector<8x256xf32> to vector<256xf32>
    %119 = vector.shape_cast %118 : vector<256xf32> to vector<1x256xf32>
    %120 = tpu.reciprocal %119 {approx = true} : vector<1x256xf32> -> vector<1x256xf32>
    %121 = tpu.iota {dimensions = array<i32: 0>} : vector<8x1xi32>
    %122 = arith.sitofp %121 : vector<8x1xi32> to vector<8x1xf32>
    %cst_48 = arith.constant 4.000000e+00 : f32
    %123 = vector.broadcast %cst_48 : f32 to vector<8x1xf32>
    %124 = arith.mulf %122, %123 : vector<8x1xf32>
    %125 = vector.broadcast %124 : vector<8x1xf32> to vector<8x256xf32>
    %126 = arith.mulf %117, %125 : vector<8x256xf32>
    %cst_49 = arith.constant dense<0.000000e+00> : vector<256xf32>
    %127 = vector.multi_reduction <add>, %126, %cst_49 [0] : vector<8x256xf32> to vector<256xf32>
    %128 = vector.shape_cast %127 : vector<256xf32> to vector<1x256xf32>
    %129 = arith.mulf %128, %120 : vector<1x256xf32>
    %130 = vector.broadcast %120 : vector<1x256xf32> to vector<8x256xf32>
    %131 = arith.mulf %112, %130 : vector<8x256xf32>
    %c0_50 = arith.constant 0 : index
    %c0_51 = arith.constant 0 : index
    %132 = vector.load %arg6[%c0_50, %c0_51] : memref<32x8xf32, #tpu.memory_space<vmem>>, vector<32x8xf32>
    %cst_52 = arith.constant dense<0.000000e+00> : vector<32x256xf32>
    %133 = tpu.matmul %132, %131, %cst_52 {dimension_numbers = #tpu.dot_dimension_numbers<[1], [0], [0], [1], [0, 0, 1, 1], [], []>} : vector<32x8xf32>, vector<8x256xf32>, vector<32x256xf32> -> vector<32x256xf32>
    %c0_53 = arith.constant 0 : index
    %c0_54 = arith.constant 0 : index
    %134 = vector.load %arg7[%c0_53, %c0_54] : memref<32x24xf32, #tpu.memory_space<vmem>>, vector<32x24xf32>
    %cst_55 = arith.constant dense<0.000000e+00> : vector<32x256xf32>
    %135 = tpu.matmul %134, %12, %cst_55 {dimension_numbers = #tpu.dot_dimension_numbers<[1], [0], [0], [1], [0, 0, 1, 1], [], []>} : vector<32x24xf32>, vector<24x256xf32>, vector<32x256xf32> -> vector<32x256xf32>
    %136 = arith.addf %133, %135 : vector<32x256xf32>
    %c0_56 = arith.constant 0 : index
    %c0_57 = arith.constant 0 : index
    %137 = vector.load %arg8[%c0_56, %c0_57] : memref<32x1xf32, #tpu.memory_space<vmem>>, vector<32x1xf32>
    %138 = vector.broadcast %137 : vector<32x1xf32> to vector<32x256xf32>
    %139 = arith.addf %136, %138 : vector<32x256xf32>
    %cst_58 = arith.constant 0.000000e+00 : f32
    %140 = vector.broadcast %cst_58 : f32 to vector<32x256xf32>
    %141 = arith.maximumf %139, %140 : vector<32x256xf32>
    %c0_59 = arith.constant 0 : index
    %c0_60 = arith.constant 0 : index
    %142 = vector.load %arg9[%c0_59, %c0_60] : memref<32x1xf32, #tpu.memory_space<vmem>>, vector<32x1xf32>
    %143 = vector.broadcast %142 : vector<32x1xf32> to vector<32x256xf32>
    %144 = arith.mulf %141, %143 : vector<32x256xf32>
    %cst_61 = arith.constant dense<0.000000e+00> : vector<256xf32>
    %145 = vector.multi_reduction <add>, %144, %cst_61 [0] : vector<32x256xf32> to vector<256xf32>
    %146 = vector.shape_cast %145 : vector<256xf32> to vector<1x256xf32>
    %c0_62 = arith.constant 0 : index
    %c0_63 = arith.constant 0 : index
    %147 = vector.load %arg10[%c0_62, %c0_63] : memref<1x1xf32, #tpu.memory_space<vmem>>, vector<1x1xf32>
    %148 = vector.broadcast %147 : vector<1x1xf32> to vector<1x256xf32>
    %149 = arith.addf %146, %148 : vector<1x256xf32>
    %c0_64 = arith.constant 0 : index
    %c0_65 = arith.constant 0 : index
    %c0_66 = arith.constant 0 : index
    %150 = vector.load %arg11[%c0_64, %c0_65, %c0_66] : memref<1x8x256xf32, #tpu.memory_space<vmem>>, vector<1x8x256xf32>
    %151 = vector.shape_cast %150 : vector<1x8x256xf32> to vector<8x256xf32>
    %152 = vector.shape_cast %112 : vector<8x256xf32> to vector<1x8x256xf32>
    tpu.vector_store %arg11[%c0_64, %c0_65, %c0_66], %152 {strides = array<i32>} : memref<1x8x256xf32, #tpu.memory_space<vmem>>, vector<1x8x256xf32>,
    %c0_67 = arith.constant 0 : index
    %c0_68 = arith.constant 0 : index
    %c0_69 = arith.constant 0 : index
    %153 = vector.load %arg12[%c0_67, %c0_68, %c0_69] : memref<1x1x256xf32, #tpu.memory_space<vmem>>, vector<1x1x256xf32>
    %154 = vector.shape_cast %153 : vector<1x1x256xf32> to vector<1x256xf32>
    %155 = vector.shape_cast %120 : vector<1x256xf32> to vector<1x1x256xf32>
    tpu.vector_store %arg12[%c0_67, %c0_68, %c0_69], %155 {strides = array<i32>} : memref<1x1x256xf32, #tpu.memory_space<vmem>>, vector<1x1x256xf32>,
    %c0_70 = arith.constant 0 : index
    %c0_71 = arith.constant 0 : index
    %c0_72 = arith.constant 0 : index
    %156 = vector.load %arg13[%c0_70, %c0_71, %c0_72] : memref<1x1x256xf32, #tpu.memory_space<vmem>>, vector<1x1x256xf32>
    %157 = vector.shape_cast %156 : vector<1x1x256xf32> to vector<1x256xf32>
    %158 = vector.shape_cast %129 : vector<1x256xf32> to vector<1x1x256xf32>
    tpu.vector_store %arg13[%c0_70, %c0_71, %c0_72], %158 {strides = array<i32>} : memref<1x1x256xf32, #tpu.memory_space<vmem>>, vector<1x1x256xf32>,
    %c0_73 = arith.constant 0 : index
    %c0_74 = arith.constant 0 : index
    %c0_75 = arith.constant 0 : index
    %159 = vector.load %arg14[%c0_73, %c0_74, %c0_75] : memref<1x1x256xf32, #tpu.memory_space<vmem>>, vector<1x1x256xf32>
    %160 = vector.shape_cast %159 : vector<1x1x256xf32> to vector<1x256xf32>
    %161 = vector.shape_cast %149 : vector<1x256xf32> to vector<1x1x256xf32>
    tpu.vector_store %arg14[%c0_73, %c0_74, %c0_75], %161 {strides = array<i32>} : memref<1x1x256xf32, #tpu.memory_space<vmem>>, vector<1x1x256xf32>,
    return
  }
  func.func @transform_0(%arg0: i32, %arg1: i32) -> (i32, i32, i32) {
    %c0_i32 = arith.constant 0 : i32
    %c0_i32_0 = arith.constant 0 : i32
    return %arg0, %c0_i32, %arg1 : i32, i32, i32
  }
  func.func @transform_1(%arg0: i32, %arg1: i32) -> (i32, i32, i32) {
    %c0_i32 = arith.constant 0 : i32
    %c0_i32_0 = arith.constant 0 : i32
    return %arg0, %c0_i32, %arg1 : i32, i32, i32
  }
  func.func @transform_2(%arg0: i32, %arg1: i32) -> (i32, i32) {
    %c0_i32 = arith.constant 0 : i32
    %c0_i32_0 = arith.constant 0 : i32
    %c0_i32_1 = arith.constant 0 : i32
    return %c0_i32, %c0_i32_0 : i32, i32
  }
  func.func @transform_3(%arg0: i32, %arg1: i32) -> (i32, i32) {
    %c0_i32 = arith.constant 0 : i32
    %c0_i32_0 = arith.constant 0 : i32
    %c0_i32_1 = arith.constant 0 : i32
    return %c0_i32, %c0_i32_0 : i32, i32
  }
  func.func @transform_4(%arg0: i32, %arg1: i32) -> (i32, i32) {
    %c0_i32 = arith.constant 0 : i32
    %c0_i32_0 = arith.constant 0 : i32
    %c0_i32_1 = arith.constant 0 : i32
    return %c0_i32, %c0_i32_0 : i32, i32
  }
  func.func @transform_5(%arg0: i32, %arg1: i32) -> (i32, i32) {
    %c0_i32 = arith.constant 0 : i32
    %c0_i32_0 = arith.constant 0 : i32
    %c0_i32_1 = arith.constant 0 : i32
    return %c0_i32, %c0_i32_0 : i32, i32
  }
  func.func @transform_6(%arg0: i32, %arg1: i32) -> (i32, i32) {
    %c0_i32 = arith.constant 0 : i32
    %c0_i32_0 = arith.constant 0 : i32
    %c0_i32_1 = arith.constant 0 : i32
    return %c0_i32, %c0_i32_0 : i32, i32
  }
  func.func @transform_7(%arg0: i32, %arg1: i32) -> (i32, i32) {
    %c0_i32 = arith.constant 0 : i32
    %c0_i32_0 = arith.constant 0 : i32
    %c0_i32_1 = arith.constant 0 : i32
    return %c0_i32, %c0_i32_0 : i32, i32
  }
  func.func @transform_8(%arg0: i32, %arg1: i32) -> (i32, i32) {
    %c0_i32 = arith.constant 0 : i32
    %c0_i32_0 = arith.constant 0 : i32
    %c0_i32_1 = arith.constant 0 : i32
    return %c0_i32, %c0_i32_0 : i32, i32
  }
  func.func @transform_9(%arg0: i32, %arg1: i32) -> (i32, i32, i32) {
    %c0_i32 = arith.constant 0 : i32
    %c0_i32_0 = arith.constant 0 : i32
    return %arg0, %c0_i32, %arg1 : i32, i32, i32
  }
  func.func @transform_10(%arg0: i32, %arg1: i32) -> (i32, i32, i32) {
    %c0_i32 = arith.constant 0 : i32
    %c0_i32_0 = arith.constant 0 : i32
    return %arg0, %c0_i32, %arg1 : i32, i32, i32
  }
  func.func @transform_11(%arg0: i32, %arg1: i32) -> (i32, i32, i32) {
    %c0_i32 = arith.constant 0 : i32
    %c0_i32_0 = arith.constant 0 : i32
    return %arg0, %c0_i32, %arg1 : i32, i32, i32
  }
  func.func @transform_12(%arg0: i32, %arg1: i32) -> (i32, i32, i32) {
    %c0_i32 = arith.constant 0 : i32
    %c0_i32_0 = arith.constant 0 : i32
    return %arg0, %c0_i32, %arg1 : i32, i32, i32
  }
}

</mosaic_0001>

<bundles_post_ra>
// kernel: iinet_forward.1
= control target key start
LH: loop header
LB: loop body
LE: loop exit
PB: predicated region body
PF: predicated region fallthrough
CT: control target
= control target key end

     0   :  { %s1924_s23 = smov 0   ;;  %s1926_s24 = smov 0   ;;  %s2348_s0 = inlined_call_operand.vmem [shape: bf16[2,48,256], index: 0, kind: input, shape index: {}]   ;;  %s2349_s1 = inlined_call_operand.vmem [shape: bf16[2,48,256], index: 1, kind: input, shape index: {}]   ;;  %s2350_s2 = inlined_call_operand.vmem [shape: bf16[40,48], index: 2, kind: input, shape index: {}]   ;;  %s2351_s3 = inlined_call_operand.vmem [shape: f32[40,1], index: 3, kind: input, shape index: {}]   ;;  %s2352_s4 = inlined_call_operand.vmem [shape: f32[32,8], index: 4, kind: input, shape index: {}]   ;;  %s2353_s5 = inlined_call_operand.vmem [shape: f32[32,24], index: 5, kind: input, shape index: {}]   ;;  %s2354_s6 = inlined_call_operand.vmem [shape: f32[32,1], index: 6, kind: input, shape index: {}]   ;;  %s2355_s7 = inlined_call_operand.vmem [shape: f32[32,1], index: 7, kind: input, shape index: {}]   ;;  %s2356_s8 = inlined_call_operand.<no memory space> [shape: f32[1,1], index: 8, kind: input, shape index: {}]   ;;  %s2357_s9 = inlined_call_operand.vmem [shape: f32[2,8,256], index: 9, kind: output, shape index: {0}]   ;;  %s2358_s10 = inlined_call_operand.vmem [shape: f32[2,1,256], index: 10, kind: output, shape index: {1}]   ;;  %s2359_s11 = inlined_call_operand.vmem [shape: f32[2,1,256], index: 11, kind: output, shape index: {2}]   ;;  %s2360_s12 = inlined_call_operand.vmem [shape: f32[2,1,256], index: 12, kind: output, shape index: {3}]  }
   0x1   :  { %v18_v0 = vstv %s2356_s8  ;;  %s1928_s25 = smov 0  }
   0x2   :  { %19 = vst [vmem:[#allocation2] sm:$0x1] %v18_v0 }
   0x3 LB: > { %s37_s8 = sadd.s32 1, %s1842_s24  ;;  %p1669_p0 = scmp.ge.s32.totalorder %s1846_s25, 1  ;;  %s1846_s25 = sphi %s1928_s25, %s25_s25   ;;  %s1842_s24 = sphi %s1926_s24, %s2364_s24   ;;  %s1838_s23 = sphi %s1924_s23, %s2363_s23  }
   0x4   : > { %p39_p1 = scmp.ge.s32.totalorder %s37_s8, 2  ;;  %p415_p2 = scmp.lt.s32.totalorder %s1846_s25, 3 }
   0x6   : > { %s2366_s8 = smov (%p39_p1, %s37_s8), 0  ;;  %p416_p3 = pnand %p1669_p0, %p415_p2 }
   0x7   : > { %p499_p4 = scmp.lt.s32.totalorder (!%p416_p3), %s1838_s23, 1  ;;  %s1850_s27 = smov (!%p416_p3), 1  }
   0x8   : > { %419 = sbr.rel (%p416_p3) target bundleno = 615 (0x267), region = 56  ;;  %s1851_s28 = smov (!%p416_p3), 3  }
   0x9   : > { %s1853_s30 = smov (!%p416_p3), 5   ;;  %s1854_s13 = smov (!%p416_p3), 6  }
   0xa   : > { %s1855_s14 = smov (!%p416_p3), 7  }
   0xd   : > { %s2368_s23 = smov (!%p499_p4, %s1838_s23), 1  ;;  %v573_v1 = vld [vmem:[%s2351_s3] sm:$0xff]  ;;  %v1848_v5 = vmov 0   ;;  %v572_v14 = vld [vmem:[%s2350_s2 + $0x10] sm:$0xf]  ;;  %v574_v25 = vld [vmem:[%s2351_s3 + $0x8] sm:$0xff] }
   0xe   : > { %s1780_s26 = smul.u32 48, %s2368_s23  ;;  %1813 = vset.pattern.permute.xlu0 %v1848_v5  ;;  %1814 = vset.pattern.permute.xlu1 %v1848_v5  ;;  %v612_v22 = vunpack.c.l.b16 %v572_v14  ;;  %v1772_v35 = vld [vmem:[%s2350_s2] sm:$0xff]  ;;  %vm646_vm0 = vcmask 392192   ;;  %vm1080_vm9 = vcmask 1040384   ;;  %vm1083_vm12 = vcmask 1041408   ;;  %s2289_s21 = sshll.u32 %s2368_s23, 1 }
   0xf   : > { %580 = vperm.xlu0 %1813, %v573_v1   ;;  %1815 = vset.pattern.permute.xlu2 %v1848_v5 }
  0x10   : > { %s506_s29 = scalar_lea.vmem %s2348_s0, %s1780_s26  ;;  %s1954_s16 = scalar_lea.vmem %s2349_s1, %s1780_s26  ;;  %v615_v32 = vpack.c.b16 %v612_v22, %v612_v22  ;;  %v1306_v22 = vld [vmem:[%s2354_s6 + $0x8] sm:$0xff] }
  0x11   : > { %v1703_v2 = vld [vmem:[%s506_s29 + $0x20] sm:$0xf]  ;;  %v1765_v3 = vld [vmem:[%s506_s29 + $0x24] sm:$0xf0]  ;;  %v1764_v4 = vld [vmem:[%s506_s29 + $0x24] sm:$0xf] }
  0x12   : > { %v1704_v6 = vor.u32 %v1765_v3, %v1703_v2  ;;  %v1705_v7 = vld [vmem:[%s506_s29 + $0x28] sm:$0xf0]  ;;  %v1695_v8 = vld [vmem:[%s506_s29 + $0x10] sm:$0xf]  ;;  %v1763_v9 = vld [vmem:[%s506_s29 + $0x14] sm:$0xf0] }
  0x13   : > { %v1708_v10 = vor.u32 %v1764_v4, %v1705_v7  ;;  %v1762_v11 = vld [vmem:[%s506_s29 + $0x14] sm:$0xf]  ;;  %v1697_v12 = vld [vmem:[%s506_s29 + $0x18] sm:$0xf0]  ;;  %v1696_v13 = vor.u32 %v1763_v9, %v1695_v8  ;;  %v1687_v16 = vld [vmem:[%s506_s29] sm:$0xf] }
  0x14   : > { %1774 = vmatpush.bf16.msra.mxu2 %v1704_v6  ;;  %661 = vmatpush.bf16.msra.mxu0 %v1704_v6  ;;  %v1700_v15 = vor.u32 %v1762_v11, %v1697_v12  ;;  %v1761_v17 = vld [vmem:[%s506_s29 + $0x4] sm:$0xf0]  ;;  %v1760_v18 = vld [vmem:[%s506_s29 + $0x4] sm:$0xf]  ;;  %v1689_v19 = vld [vmem:[%s506_s29 + $0x8] sm:$0xf0] }
  0x15   : > { %1777 = vmatpush.bf16.msra.mxu3 %v1708_v10  ;;  %684 = vmatpush.bf16.msra.mxu1 %v1708_v10  ;;  %v1733_v20 = vld [vmem:[%s1954_s16 + $0x20] sm:$0xf]  ;;  %v1771_v21 = vld [vmem:[%s1954_s16 + $0x24] sm:$0xf0]  ;;  %v1770_v23 = vld [vmem:[%s1954_s16 + $0x24] sm:$0xf]  ;;  %v1688_v26 = vor.u32 %v1761_v17, %v1687_v16  ;;  %v1692_v27 = vor.u32 %v1760_v18, %v1689_v19 }
  0x16   : > { %v1735_v24 = vld [vmem:[%s1954_s16 + $0x28] sm:$0xf0]  ;;  %v1734_v28 = vor.u32 %v1771_v21, %v1733_v20  ;;  %v1725_v30 = vld [vmem:[%s1954_s16 + $0x10] sm:$0xf]  ;;  %v1769_v31 = vld [vmem:[%s1954_s16 + $0x14] sm:$0xf0] }
  0x17   : > { %v1738_v29 = vor.u32 %v1770_v23, %v1735_v24  ;;  %585 = vperm.xlu0 %1813, %v574_v25   ;;  %v1768_v33 = vld [vmem:[%s1954_s16 + $0x14] sm:$0xf]  ;;  %v1727_v34 = vld [vmem:[%s1954_s16 + $0x18] sm:$0xf0]  ;;  %v1726_v36 = vor.u32 %v1769_v31, %v1725_v30  ;;  %v1717_v38 = vld [vmem:[%s1954_s16] sm:$0xf] }
  0x18   : > { %1775 = vmatpush.bf16.msra.mxu2 %v1696_v13  ;;  %662 = vmatpush.bf16.msra.mxu0 %v1696_v13  ;;  %v1730_v37 = vor.u32 %v1768_v33, %v1727_v34  ;;  %v1767_v39 = vld [vmem:[%s1954_s16 + $0x4] sm:$0xf0]  ;;  %v1766_v40 = vld [vmem:[%s1954_s16 + $0x4] sm:$0xf]  ;;  %v1719_v41 = vld [vmem:[%s1954_s16 + $0x8] sm:$0xf0] }
  0x19   : > { %1778 = vmatpush.bf16.msra.mxu3 %v1700_v15  ;;  %685 = vmatpush.bf16.msra.mxu1 %v1700_v15  ;;  %v1718_v42 = vor.u32 %v1767_v39, %v1717_v38  ;;  %v1722_v43 = vor.u32 %v1766_v40, %v1719_v41  ;;  %s1849_s26 = smov 2   ;;  %s1852_s29 = smov 4   ;;  %v577_v16 = vld [vmem:[%s2351_s3 + $0x20] sm:$0xff]  ;;  %v1773_v17 = vld [vmem:[%s2350_s2 + $0x8] sm:$0xff]  ;;  %v1308_v19 = vld [vmem:[%s2354_s6 + $0x18] sm:$0xff] }
  0x1a   : > { %v1305_v18 = vld [vmem:[%s2354_s6] sm:$0xff]  ;;  %v576_v20 = vld [vmem:[%s2351_s3 + $0x18] sm:$0xff]  ;;  %v1347_v21 = vld [vmem:[%s2355_s7 + $0x10] sm:$0xff] }
  0x1b   : > { %v1345_v24 = vld [vmem:[%s2355_s7] sm:$0xff]  ;;  %v575_v25 = vld [vmem:[%s2351_s3 + $0x10] sm:$0xff] }
  0x1c   : > { %1776 = vmatpush.bf16.msra.mxu2 %v1688_v26  ;;  %663 = vmatpush.bf16.msra.mxu0 %v1688_v26 }
  0x1d   : > { %1779 = vmatpush.bf16.msra.mxu3 %v1692_v27  ;;  %686 = vmatpush.bf16.msra.mxu1 %v1692_v27  ;;  %v1348_v27 = vld [vmem:[%s2355_s7 + $0x18] sm:$0xff] }
  0x1f   : > { %1711 = vmatmul.msk.bf16.vlgmr.msra.gmra.mxu2 %vm646_vm0, %v615_v32  ;;  %1709 = vmatmul.msk.bf16.vlgmr.msra.gmra.mxu0 %vm646_vm0, %v1772_v35 }
  0x20   : > { %747 = vmatpush.bf16.msrb.mxu2 %v1734_v28  ;;  %1714 = vmatmul.msk.bf16.vlgmr.msra.gmra.mxu3 %vm646_vm0, %v615_v32  ;;  %v774_v28 = vlaneseq }
  0x21   : > { %761 = vmatpush.bf16.msrb.mxu3 %v1738_v29  ;;  %1712 = vmatmul.msk.bf16.vlgmr.msra.gmra.mxu1 %vm646_vm0, %v1772_v35  ;;  %v1307_v29 = vld [vmem:[%s2354_s6 + $0x10] sm:$0xff] }
  0x22   : > { %v2049_v31 = vand.u32 127, %v774_v28 }
  0x24   : > { %748 = vmatpush.bf16.msrb.mxu2 %v1726_v36  ;;  %vm866_vm1 = vcmp.lt.s32.totalorder %v2049_v31, 2  ;;  %vm829_vm2 = vcmp.lt.s32.totalorder %v2049_v31, 1  ;;  %vm903_vm3 = vcmp.lt.s32.totalorder %v2049_v31, 3  ;;  %vm940_vm4 = vcmp.lt.s32.totalorder %v2049_v31, 4 }
  0x25   : > { %762 = vmatpush.bf16.msrb.mxu3 %v1730_v37  ;;  %vm977_vm5 = vcmp.lt.s32.totalorder %v2049_v31, 5  ;;  %vm1014_vm6 = vcmp.lt.s32.totalorder %v2049_v31, 6  ;;  %vm1051_vm13 = vcmp.lt.s32.totalorder %v2049_v31, 7 }
  0x28   : > { %749 = vmatpush.bf16.msrb.mxu2 %v1718_v42 }
  0x29   : > { %763 = vmatpush.bf16.msrb.mxu3 %v1722_v43  ;;  %v1346_v43 = vld [vmem:[%s2355_s7 + $0x8] sm:$0xff] }
  0x2f   : > { %1739 = vmatmul.msk.bf16.vlgmr.msrb.gmra.mxu2 %vm646_vm0, %v1772_v35  ;;  %1710 = vmatmul.msk.bf16.gmra.mxu0 %vm646_vm0, %v1773_v17 }
  0x30   : > { %1740 = vmatmul.msk.bf16.vlgmr.msrb.gmra.mxu3 %vm646_vm0, %v1772_v35 }
  0x31   : > { %1713 = vmatmul.msk.bf16.gmra.mxu1 %vm646_vm0, %v1773_v17 }
  0x81   : > { %v581_v48 = vpop.permute.xlu0 %580 }
  0x89   : > { %v586_v58 = vpop.permute.xlu0 %585 }
  0x9c   : > { %v665_v49 = vpop.f32.mrf.mxu0 }
  0x9d   : > { %v666_v51 = vadd.f32 %v665_v49, %v581_v48  ;;  %v1395_v49 = vld [vmem:[#allocation2] sm:$0x1] }
  0x9e   : > { %v688_v50 = vpop.f32.mrf.mxu1 }
  0x9f   : > { %v1987_v53 = vmax.f32 %v666_v51, 0.0  ;;  %v689_v63 = vadd.f32 %v688_v50, %v581_v48 }
  0xa1   : > { %v1993_v5 = vmax.f32 %v689_v63, 0.0 }
  0xa2   : > { %v1983_v44 = vpop.f32.mrf.mxu2 }
  0xa3   : > { %v1985_v45 = vpop.f32.mrf.mxu3 }
  0xa4   : > { %v667_v59 = vpop.f32.mrf.mxu0 }
  0xa5   : > { %v668_v0 = vadd.f32 %v667_v59, %v586_v58 }
  0xa6   : > { %v690_v61 = vpop.f32.mrf.mxu1 }
  0xa7   : > { %v691_v1 = vadd.f32 %v690_v61, %v586_v58  ;;  %v1995_v7 = vmax.f32 %v668_v0, 0.0 }
  0xa9   : > { %v1997_v9 = vmax.f32 %v691_v1, 0.0 }
  0xaa   : > { %v677_v46 = vpop.f32.mrf.mxu2 }
  0xab   : > { %v700_v47 = vpop.f32.mrf.mxu3 }
  0xb2   : > { %v751_v52 = vpop.f32.mrf.mxu2 }
  0xb3   : > { %v752_v54 = vadd.f32 %v751_v52, %v581_v48  ;;  %v765_v55 = vpop.f32.mrf.mxu3 }
  0xb4   : > { %v766_v56 = vadd.f32 %v765_v55, %v581_v48 }
  0xb5   : > { %v770_v57 = vmax.f32 %v752_v54, 0.0 }
  0xb6   : > { %v771_v60 = vmax.f32 %v766_v56, 0.0 }
  0xb7   : > { %858 = vrot.lane.b32.xlu0 %v770_v57, %s1849_s26  ;;  %821 = vrot.lane.b32.xlu1 %v770_v57, %s1850_s27  ;;  %v801_v62 = vmul.f32 %v770_v57, %v1987_v53 }
  0xb8   : > { %825 = vrot.lane.b32.xlu2 %v771_v60, %s1850_s27  ;;  %v802_v12 = vmul.f32 %v771_v60, %v1993_v5 }
  0xba   : > { %v753_v2 = vpop.f32.mrf.mxu2 }
  0xbb   : > { %v754_v3 = vadd.f32 %v753_v2, %v586_v58  ;;  %v767_v4 = vpop.f32.mrf.mxu3 }
  0xbc   : > { %v768_v6 = vadd.f32 %v767_v4, %v586_v58 }
  0xbd   : > { %v772_v8 = vmax.f32 %v754_v3, 0.0 }
  0xbe   : > { %v773_v10 = vmax.f32 %v768_v6, 0.0 }
  0xbf   : > { %895 = vrot.lane.b32.xlu1 %v770_v57, %s1851_s28  ;;  %899 = vrot.lane.b32.xlu0 %v771_v60, %s1851_s28  ;;  %v803_v11 = vmul.f32 %v772_v8, %v1995_v7 }
  0xc0   : > { %862 = vrot.lane.b32.xlu2 %v771_v60, %s1849_s26  ;;  %v804_v13 = vmul.f32 %v773_v10, %v1997_v9 }
  0xc1   : > { %v2003_v14 = vadd.f32 %v803_v11, %v801_v62 }
  0xc2   : > { %v2005_v15 = vadd.f32 %v804_v13, %v802_v12 }
  0xc3   : > { %v806_v50 = vrot.slane %v2003_v14, 4 }
  0xc4   : > { %v813_v51 = vrot.slane %v2005_v15, 4 }
  0xc5   : > { %v807_v55 = vadd.f32 %v806_v50, %v2003_v14 }
  0xc6   : > { %v814_v56 = vadd.f32 %v813_v51, %v2005_v15 }
  0xc7   : > { %936 = vrot.lane.b32.xlu1 %v771_v60, %s1852_s29  ;;  %969 = vrot.lane.b32.xlu0 %v770_v57, %s1853_s30  ;;  %v808_v58 = vrot.slane %v807_v55, 2 }
  0xc8   : > { %932 = vrot.lane.b32.xlu2 %v770_v57, %s1852_s29  ;;  %v815_v59 = vrot.slane %v814_v56, 2 }
  0xc9   : > { %v809_v62 = vadd.f32 %v808_v58, %v807_v55 }
  0xca   : > { %v816_v63 = vadd.f32 %v815_v59, %v814_v56 }
  0xcb   : > { %v810_v0 = vrot.slane %v809_v62, 1 }
  0xcc   : > { %v817_v2 = vrot.slane %v816_v63, 1 }
  0xcd   : > { %v811_v3 = vadd.f32 %v810_v0, %v809_v62 }
  0xce   : > { %v818_v12 = vadd.f32 %v817_v2, %v816_v63 }
  0xcf   : > { %1006 = vrot.lane.b32.xlu1 %v770_v57, %s1854_s13  ;;  %1010 = vrot.lane.b32.xlu0 %v771_v60, %s1854_s13 }
  0xd0   : > { %973 = vrot.lane.b32.xlu2 %v771_v60, %s1853_s30 }
  0xd7   : > { %823 = vrot.lane.b32.xlu1 %v772_v8, %s1850_s27  ;;  %864 = vrot.lane.b32.xlu0 %v773_v10, %s1849_s26 }
  0xd8   : > { %1043 = vrot.lane.b32.xlu2 %v770_v57, %s1855_s14 }
  0xdf   : > { %860 = vrot.lane.b32.xlu1 %v772_v8, %s1849_s26  ;;  %934 = vrot.lane.b32.xlu0 %v772_v8, %s1852_s29  ;;  %s553_s26 = scalar_lea.vmem %s2360_s12, %s2289_s21 }
  0xe0   : > { %827 = vrot.lane.b32.xlu2 %v773_v10, %s1850_s27  ;;  %s1759_s27 = sshll.u32 %s2368_s23, 4 }
  0xe7   : > { %901 = vrot.lane.b32.xlu1 %v773_v10, %s1851_s28  ;;  %975 = vrot.lane.b32.xlu0 %v773_v10, %s1853_s30 }
  0xe8   : > { %897 = vrot.lane.b32.xlu2 %v772_v8, %s1851_s28  ;;  %s535_s28 = scalar_lea.vmem %s2358_s10, %s2289_s21 }
  0xef   : > { %971 = vrot.lane.b32.xlu1 %v772_v8, %s1853_s30  ;;  %1045 = vrot.lane.b32.xlu0 %v772_v8, %s1855_s14 }
  0xf0   : > { %938 = vrot.lane.b32.xlu2 %v773_v10, %s1852_s29 }
  0xf7   : > { %1012 = vrot.lane.b32.xlu1 %v773_v10, %s1854_s13  ;;  %600 = vperm.xlu0 %1813, %v577_v16  }
  0xf8   : > { %1008 = vrot.lane.b32.xlu2 %v772_v8, %s1854_s13  ;;  %v776_v8 = vadd.s32 128, %v2049_v31  ;;  %s544_s13 = scalar_lea.vmem %s2359_s11, %s2289_s21 }
  0xff   : > { %1047 = vrot.lane.b32.xlu1 %v771_v60, %s1855_s14  ;;  %1311 = vperm.xlu0 %1813, %v1305_v18  }
 0x100   : > { %1049 = vrot.lane.b32.xlu2 %v773_v10, %s1855_s14  ;;  %s526_s14 = scalar_lea.vmem %s2357_s9, %s1759_s27 }
 0x107   : > { %1326 = vperm.xlu0 %1813, %v1308_v19   ;;  %595 = vperm.xlu1 %1814, %v576_v20   ;;  %v2099_v19 = vand.u32 15, %v2049_v31  ;;  %v2101_v20 = vand.u32 15, %v776_v8 }
 0x108   : > { %590 = vperm.xlu2 %1815, %v575_v25  }
 0x109   : > { %vm854_vm7 = vcmp.ge.s32.totalorder %v2099_v19, 1  ;;  %vm855_vm8 = vcmp.ge.s32.totalorder %v2101_v20, 1  ;;  %vm891_vm10 = vcmp.ge.s32.totalorder %v2099_v19, 2  ;;  %vm892_vm11 = vcmp.ge.s32.totalorder %v2101_v20, 2 }
 0x10a   : > { %vm965_vm14 = vcmp.ge.s32.totalorder %v2099_v19, 4  ;;  %vm928_vm15 = vcmp.ge.s32.totalorder %v2099_v19, 3  ;;  %vm929_vm0 = vcmp.ge.s32.totalorder %v2101_v20, 3 }
 0x10f   : > { %1361 = vperm.xlu0 %1813, %v1347_v21   ;;  %1316 = vperm.xlu1 %1814, %v1306_v22   ;;  %v2103_v21 = vmul.f32 0.0625, %v811_v3  ;;  %v2106_v22 = vmul.f32 0.0625, %v818_v12 }
 0x110   : > { %1321 = vperm.xlu2 %1815, %v1307_v29  }
 0x112   : > { %v826_v23 = vpop.permute.xlu2 %825 }
 0x117   : > { %1351 = vperm.xlu1 %1814, %v1345_v24  }
 0x118   : > { %1356 = vperm.xlu2 %1815, %v1346_v43  }
 0x11a   : > { %v863_v26 = vpop.permute.xlu2 %862 }
 0x11f   : > { %1366 = vperm.xlu1 %1814, %v1348_v27  }
 0x120   : > { %1398 = vperm.xlu2 %1815, %v1395_v49  }
 0x122   : > { %v2046_v30 = vpop.permute.xlu2 %932 }
 0x129   : > { %v859_v32 = vpop.permute.xlu0 %858  ;;  %v822_v33 = vpop.permute.xlu1 %821 }
 0x12a   : > { %v867_v34 = vsel %vm866_vm1, %v859_v32, %v863_v26  ;;  %v869_v35 = vsel %vm866_vm1, %v863_v26, %v859_v32  ;;  %v830_v36 = vsel %vm829_vm2, %v822_v33, %v826_v23  ;;  %v832_v37 = vsel %vm829_vm2, %v826_v23, %v822_v33  ;;  %v974_v38 = vpop.permute.xlu2 %973 }
 0x12b   : > { %v2062_v39 = vmul.f32 %v869_v35, %v1987_v53  ;;  %v2065_v40 = vmul.f32 %v867_v34, %v1993_v5  ;;  %v834_v41 = vmul.f32 %v832_v37, %v1987_v53  ;;  %v835_v42 = vmul.f32 %v830_v36, %v1993_v5 }
 0x131   : > { %v896_v46 = vpop.permute.xlu1 %895  ;;  %v900_v47 = vpop.permute.xlu0 %899 }
 0x132   : > { %v2072_v48 = vpop.permute.xlu2 %1043  ;;  %v904_v15 = vsel %vm903_vm3, %v896_v46, %v900_v47  ;;  %v906_v16 = vsel %vm903_vm3, %v900_v47, %v896_v46 }
 0x133   : > { %v2109_v25 = vmul.f32 %v906_v16, %v1987_v53  ;;  %v2112_v26 = vmul.f32 %v904_v15, %v1993_v5 }
 0x139   : > { %v937_v52 = vpop.permute.xlu1 %936  ;;  %v970_v54 = vpop.permute.xlu0 %969 }
 0x13a   : > { %v828_v57 = vpop.permute.xlu2 %827  ;;  %v941_v27 = vsel %vm940_vm4, %v2046_v30, %v937_v52  ;;  %v943_v29 = vsel %vm940_vm4, %v937_v52, %v2046_v30  ;;  %v978_v33 = vsel %vm977_vm5, %v970_v54, %v974_v38  ;;  %v980_v34 = vsel %vm977_vm5, %v974_v38, %v970_v54 }
 0x13b   : > { %v945_v51 = vmul.f32 %v943_v29, %v1987_v53  ;;  %v946_v52 = vmul.f32 %v941_v27, %v1993_v5  ;;  %v2143_v62 = vmul.f32 %v980_v34, %v1987_v53  ;;  %v2146_v63 = vmul.f32 %v978_v33, %v1993_v5 }
 0x141   : > { %v2078_v60 = vpop.permute.xlu1 %1006  ;;  %v2080_v61 = vpop.permute.xlu0 %1010 }
 0x142   : > { %v2082_v1 = vpop.permute.xlu2 %897 }
 0x149   : > { %v824_v4 = vpop.permute.xlu1 %823  ;;  %v865_v6 = vpop.permute.xlu0 %864 }
 0x14a   : > { %v831_v10 = vsel %vm829_vm2, %v824_v4, %v828_v57  ;;  %v833_v11 = vsel %vm829_vm2, %v828_v57, %v824_v4  ;;  %v939_v32 = vpop.permute.xlu2 %938  ;;  %vm1089_vm2 = vcmask 1043456  }
 0x14b   : > { %v836_v13 = vmul.f32 %v833_v11, %v1995_v7  ;;  %v837_v14 = vmul.f32 %v831_v10, %v1997_v9  ;;  %v1015_v10 = vsel %vm1014_vm6, %v2078_v60, %v2080_v61 }
 0x14d   : > { %v838_v17 = vadd.f32 %v836_v13, %v834_v41  ;;  %v845_v18 = vadd.f32 %v837_v14, %v835_v42 }
 0x14f   : > { %v839_v23 = vrot.slane %v838_v17, 4  ;;  %v846_v24 = vrot.slane %v845_v18, 4 }
 0x151   : > { %v840_v35 = vadd.f32 %v839_v23, %v838_v17  ;;  %v847_v36 = vadd.f32 %v846_v24, %v845_v18  ;;  %v861_v37 = vpop.permute.xlu1 %860  ;;  %v935_v41 = vpop.permute.xlu0 %934 }
 0x152   : > { %v868_v42 = vsel %vm866_vm1, %v861_v37, %v865_v6  ;;  %v870_v30 = vsel %vm866_vm1, %v865_v6, %v861_v37  ;;  %v942_v43 = vsel %vm940_vm4, %v935_v41, %v939_v32  ;;  %v944_v38 = vsel %vm940_vm4, %v939_v32, %v935_v41 }
 0x153   : > { %v841_v46 = vrot.slane %v840_v35, 2  ;;  %v848_v47 = vrot.slane %v847_v36, 2  ;;  %v873_v49 = vmul.f32 %v870_v30, %v1995_v7  ;;  %v874_v50 = vmul.f32 %v868_v42, %v1997_v9 }
 0x154   : > { %v947_v54 = vmul.f32 %v944_v38, %v1995_v7  ;;  %v948_v55 = vmul.f32 %v942_v43, %v1997_v9  ;;  %vm1086_vm1 = vcmask 1042432   ;;  %vm1003_vm4 = vcmp.ge.s32.totalorder %v2101_v20, 5 }
 0x155   : > { %v842_v56 = vadd.f32 %v841_v46, %v840_v35  ;;  %v849_v57 = vadd.f32 %v848_v47, %v847_v36  ;;  %v875_v58 = vadd.f32 %v873_v49, %v2062_v39  ;;  %v882_v59 = vadd.f32 %v874_v50, %v2065_v40 }
 0x156   : > { %v949_v0 = vadd.f32 %v947_v54, %v945_v51  ;;  %v956_v2 = vadd.f32 %v948_v55, %v946_v52  ;;  %v1017_v39 = vsel %vm1014_vm6, %v2080_v61, %v2078_v60  ;;  %v2180_v54 = vmul.f32 %v1015_v10, %v1993_v5 }
 0x157   : > { %v843_v3 = vrot.slane %v842_v56, 1  ;;  %v850_v4 = vrot.slane %v849_v57, 1  ;;  %v876_v6 = vrot.slane %v875_v58, 4  ;;  %v883_v8 = vrot.slane %v882_v59, 4 }
 0x158   : > { %v950_v40 = vrot.slane %v949_v0, 4  ;;  %v957_v11 = vrot.slane %v956_v2, 4  ;;  %v2171_v43 = vmul.f32 %v1017_v39, %v1987_v53 }
 0x159   : > { %v844_v12 = vadd.f32 %v843_v3, %v842_v56  ;;  %v851_v13 = vadd.f32 %v850_v4, %v849_v57  ;;  %v877_v14 = vadd.f32 %v876_v6, %v875_v58  ;;  %v884_v15 = vadd.f32 %v883_v8, %v882_v59  ;;  %v902_v16 = vpop.permute.xlu1 %901  ;;  %v976_v17 = vpop.permute.xlu0 %975 }
 0x15a   : > { %v951_v18 = vadd.f32 %v950_v40, %v949_v0  ;;  %v958_v23 = vadd.f32 %v957_v11, %v956_v2  ;;  %v905_v24 = vsel %vm903_vm3, %v2082_v1, %v902_v16  ;;  %v907_v60 = vsel %vm903_vm3, %v902_v16, %v2082_v1  ;;  %v1009_v1 = vpop.permute.xlu2 %1008 }
 0x15b   : > { %v852_v61 = vmul.f32 0.0625, %v844_v12  ;;  %v853_v27 = vmul.f32 0.0625, %v851_v13  ;;  %v878_v29 = vrot.slane %v877_v14, 2  ;;  %v885_v32 = vrot.slane %v884_v15, 2 }
 0x15c   : > { %v952_v33 = vrot.slane %v951_v18, 2  ;;  %v959_v34 = vrot.slane %v958_v23, 2  ;;  %v910_v35 = vmul.f32 %v907_v60, %v1995_v7  ;;  %v911_v36 = vmul.f32 %v905_v24, %v1997_v9 }
 0x15d   : > { %v856_v37 = vsel %vm854_vm7, %v852_v61, 0.0  ;;  %v857_v41 = vsel %vm855_vm8, %v853_v27, 0.0  ;;  %v879_v42 = vadd.f32 %v878_v29, %v877_v14  ;;  %v886_v30 = vadd.f32 %v885_v32, %v884_v15 }
 0x15e   : > { %v1081_v38 = vsel %vm1080_vm9, %v2103_v21, %v856_v37  ;;  %v1082_v46 = vsel %vm1080_vm9, %v2106_v22, %v857_v41  ;;  %v953_v47 = vadd.f32 %v952_v33, %v951_v18  ;;  %v912_v51 = vadd.f32 %v910_v35, %v2109_v25 }
 0x15f   : > { %v880_v49 = vrot.slane %v879_v42, 1  ;;  %v887_v50 = vrot.slane %v886_v30, 1  ;;  %v919_v52 = vadd.f32 %v911_v36, %v2112_v26  ;;  %v960_v56 = vadd.f32 %v959_v34, %v958_v23 }
 0x160   : > { %v954_v55 = vrot.slane %v953_v47, 1  ;;  %v913_v21 = vrot.slane %v912_v51, 4  ;;  %vm1002_vm3 = vcmp.ge.s32.totalorder %v2099_v19, 5  ;;  %vm1039_vm7 = vcmp.ge.s32.totalorder %v2099_v19, 6 }
 0x161   : > { %v881_v57 = vadd.f32 %v880_v49, %v879_v42  ;;  %v888_v58 = vadd.f32 %v887_v50, %v886_v30  ;;  %v920_v59 = vrot.slane %v919_v52, 4  ;;  %v972_v0 = vpop.permute.xlu1 %971  ;;  %v1046_v22 = vpop.permute.xlu0 %1045  ;;  %v961_v10 = vrot.slane %v960_v56, 1 }
 0x162   : > { %v955_v2 = vadd.f32 %v954_v55, %v953_v47  ;;  %v979_v25 = vsel %vm977_vm5, %v972_v0, %v976_v17  ;;  %v981_v26 = vsel %vm977_vm5, %v976_v17, %v972_v0  ;;  %v914_v6 = vadd.f32 %v913_v21, %v912_v51  ;;  %v1050_v24 = vpop.permute.xlu2 %1049 }
 0x163   : > { %v889_v3 = vmul.f32 0.0625, %v881_v57  ;;  %v890_v4 = vmul.f32 0.0625, %v888_v58  ;;  %v921_v8 = vadd.f32 %v920_v59, %v919_v52  ;;  %v984_v40 = vmul.f32 %v981_v26, %v1995_v7 }
 0x164   : > { %v963_v39 = vmul.f32 0.0625, %v955_v2  ;;  %v985_v11 = vmul.f32 %v979_v25, %v1997_v9  ;;  %v915_v14 = vrot.slane %v914_v6, 2  ;;  %v962_v27 = vadd.f32 %v961_v10, %v960_v56 }
 0x165   : > { %v893_v12 = vsel %vm891_vm10, %v889_v3, 0.0  ;;  %v894_v13 = vsel %vm892_vm11, %v890_v4, 0.0  ;;  %v922_v15 = vrot.slane %v921_v8, 2  ;;  %v986_v60 = vadd.f32 %v984_v40, %v2143_v62 }
 0x166   : > { %v1084_v16 = vsel %vm1083_vm12, %v1081_v38, %v893_v12  ;;  %v1085_v17 = vsel %vm1083_vm12, %v1082_v46, %v894_v13  ;;  %v916_v18 = vadd.f32 %v915_v14, %v914_v6  ;;  %v993_v61 = vadd.f32 %v985_v11, %v2146_v63 }
 0x167   : > { %v923_v23 = vadd.f32 %v922_v15, %v921_v8  ;;  %v967_v29 = vsel %vm965_vm14, %v963_v39, 0.0  ;;  %v1055_v32 = vsel %vm1051_vm13, %v1050_v24, %v1046_v22  ;;  %v987_v35 = vrot.slane %v986_v60, 4 }
 0x168   : > { %v917_v33 = vrot.slane %v916_v18, 1  ;;  %v994_v36 = vrot.slane %v993_v61, 4  ;;  %v1053_v42 = vsel %vm1051_vm13, %v1046_v22, %v1050_v24  ;;  %v1058_v62 = vmul.f32 %v1055_v32, %v1995_v7  ;;  %v693_v32 = vpop.f32.mrf.mxu1 }
 0x169   : > { %v924_v34 = vrot.slane %v923_v23, 1  ;;  %v1013_v37 = vpop.permute.xlu1 %1012  ;;  %v601_v41 = vpop.permute.xlu0 %600  ;;  %v988_v47 = vadd.f32 %v987_v35, %v986_v60  ;;  %v1059_v6 = vmul.f32 %v1053_v42, %v1997_v9  ;;  %vm966_vm5 = vcmp.ge.s32.totalorder %v2101_v20, 4 }
 0x16a   : > { %v1016_v63 = vsel %vm1014_vm6, %v1009_v1, %v1013_v37  ;;  %v1018_v30 = vsel %vm1014_vm6, %v1013_v37, %v1009_v1  ;;  %v918_v38 = vadd.f32 %v917_v33, %v916_v18  ;;  %v995_v49 = vadd.f32 %v994_v36, %v993_v61 }
 0x16b   : > { %v925_v46 = vadd.f32 %v924_v34, %v923_v23  ;;  %v1021_v50 = vmul.f32 %v1018_v30, %v1995_v7  ;;  %v1022_v51 = vmul.f32 %v1016_v63, %v1997_v9  ;;  %v676_v52 = vadd.f32 %v1983_v44, %v601_v41 }
 0x16c   : > { %v699_v55 = vadd.f32 %v1985_v45, %v601_v41  ;;  %v926_v56 = vmul.f32 0.0625, %v918_v38  ;;  %v989_v58 = vrot.slane %v988_v47, 2  ;;  %v996_v21 = vrot.slane %v995_v49, 2 }
 0x16d   : > { %v927_v57 = vmul.f32 0.0625, %v925_v46  ;;  %v1023_v1 = vadd.f32 %v1021_v50, %v2171_v43  ;;  %v1030_v59 = vadd.f32 %v1022_v51, %v2180_v54  ;;  %v710_v0 = vmax.f32 %v676_v52, 0.0 }
 0x16e   : > { %v711_v22 = vmax.f32 %v699_v55, 0.0  ;;  %v930_v2 = vsel %vm928_vm15, %v926_v56, 0.0  ;;  %v990_v25 = vadd.f32 %v989_v58, %v988_v47  ;;  %v997_v44 = vadd.f32 %v996_v21, %v995_v49  ;;  %v591_v47 = vpop.permute.xlu2 %590 }
 0x16f   : > { %v931_v7 = vsel %vm929_vm0, %v927_v57, 0.0  ;;  %v1087_v45 = vsel %vm1086_vm1, %v1084_v16, %v930_v2  ;;  %v1024_v3 = vrot.slane %v1023_v1, 4  ;;  %v1031_v4 = vrot.slane %v1030_v59, 4  ;;  %1189 = vmatpush.msra.mxu2 %v710_v0 }
 0x170   : > { %v1088_v26 = vsel %vm1086_vm1, %v1085_v17, %v931_v7  ;;  %1218 = vmatpush.msra.mxu3 %v711_v22  ;;  %v991_v43 = vrot.slane %v990_v25, 1  ;;  %v998_v54 = vrot.slane %v997_v44, 1  ;;  %v1090_v10 = vsel %vm1089_vm2, %v1087_v45, %v967_v29  ;;  %v670_v29 = vpop.f32.mrf.mxu0 }
 0x171   : > { %v1048_v8 = vpop.permute.xlu1 %1047  ;;  %v1025_v39 = vadd.f32 %v1024_v3, %v1023_v1  ;;  %v1032_v40 = vadd.f32 %v1031_v4, %v1030_v59  ;;  %v964_v9 = vmul.f32 0.0625, %v962_v27  ;;  %vm1092_vm6 = vcmask 1044480   ;;  %v695_v59 = vpop.f32.mrf.mxu1 }
 0x172   : > { %v1052_v11 = vsel %vm1051_vm13, %v2072_v48, %v1048_v8  ;;  %v1054_v12 = vsel %vm1051_vm13, %v1048_v8, %v2072_v48  ;;  %v992_v13 = vadd.f32 %v991_v43, %v990_v25  ;;  %v999_v14 = vadd.f32 %v998_v54, %v997_v44  ;;  %v1159_v8 = vld [vmem:[%s2353_s5] sm:$0xff] }
 0x173   : > { %v1056_v15 = vmul.f32 %v1054_v12, %v1987_v53  ;;  %v1057_v16 = vmul.f32 %v1052_v11, %v1993_v5  ;;  %v1026_v17 = vrot.slane %v1025_v39, 2  ;;  %v1033_v18 = vrot.slane %v1032_v40, 2 }
 0x174   : > { %v1000_v23 = vmul.f32 0.0625, %v992_v13  ;;  %v1001_v24 = vmul.f32 0.0625, %v999_v14  ;;  %v968_v36 = vsel %vm966_vm5, %v964_v9, 0.0  ;;  %vm1040_vm8 = vcmp.ge.s32.totalorder %v2101_v20, 6 }
 0x175   : > { %v1060_v60 = vadd.f32 %v1058_v62, %v1056_v15  ;;  %v1067_v61 = vadd.f32 %v1059_v6, %v1057_v16  ;;  %v1027_v31 = vadd.f32 %v1026_v17, %v1025_v39  ;;  %v1034_v48 = vadd.f32 %v1033_v18, %v1032_v40 }
 0x176   : > { %v1004_v53 = vsel %vm1002_vm3, %v1000_v23, 0.0  ;;  %v1005_v33 = vsel %vm1003_vm4, %v1001_v24, 0.0  ;;  %v1091_v30 = vsel %vm1089_vm2, %v1088_v26, %v968_v36  ;;  %v671_v52 = vadd.f32 %v670_v29, %v591_v47 }
 0x177   : > { %v1061_v5 = vrot.slane %v1060_v60, 4  ;;  %v1068_v27 = vrot.slane %v1067_v61, 4  ;;  %v1028_v34 = vrot.slane %v1027_v31, 1  ;;  %v1035_v35 = vrot.slane %v1034_v48, 1 }
 0x178   : > { %v1093_v42 = vsel %vm1092_vm6, %v1090_v10, %v1004_v53  ;;  %v1094_v49 = vsel %vm1092_vm6, %v1091_v30, %v1005_v33  ;;  %vm1095_vm10 = vcmask 1045504   ;;  %v672_v57 = vpop.f32.mrf.mxu0  ;;  %v694_v21 = vadd.f32 %v693_v32, %v591_v47 }
 0x179   : > { %v1062_v37 = vadd.f32 %v1061_v5, %v1060_v60  ;;  %v1069_v41 = vadd.f32 %v1068_v27, %v1067_v61  ;;  %v1029_v62 = vadd.f32 %v1028_v34, %v1027_v31  ;;  %v1036_v63 = vadd.f32 %v1035_v35, %v1034_v48  ;;  %v596_v58 = vpop.permute.xlu1 %595  ;;  %v1160_v5 = vld [vmem:[%s2353_s5 + $0x8] sm:$0xff]  ;;  %v1161_v35 = vld [vmem:[%s2353_s5 + $0x10] sm:$0xff] }
 0x17a   : > { %v673_v1 = vadd.f32 %v672_v57, %v596_v58  ;;  %v696_v25 = vadd.f32 %v695_v59, %v596_v58  ;;  %v706_v26 = vmax.f32 %v671_v52, 0.0  ;;  %v707_v6 = vmax.f32 %v694_v21, 0.0  ;;  %v1162_v57 = vld [vmem:[%s2353_s5 + $0x18] sm:$0xff] }
 0x17b   : > { %v1063_v38 = vrot.slane %v1062_v37, 2  ;;  %v1070_v46 = vrot.slane %v1069_v41, 2  ;;  %v1037_v50 = vmul.f32 0.0625, %v1029_v62  ;;  %v1038_v51 = vmul.f32 0.0625, %v1036_v63 }
 0x17c   : > { %v708_v45 = vmax.f32 %v673_v1, 0.0  ;;  %v709_v54 = vmax.f32 %v696_v25, 0.0  ;;  %vm1163_vm11 = vcmask 195584   ;;  %vm1076_vm12 = vcmp.ge.s32.totalorder %v2099_v19, 7 }
 0x17d   : > { %v1064_v55 = vadd.f32 %v1063_v38, %v1062_v37  ;;  %v1071_v56 = vadd.f32 %v1070_v46, %v1069_v41  ;;  %v1041_v0 = vsel %vm1039_vm7, %v1037_v50, 0.0  ;;  %v1042_v22 = vsel %vm1040_vm8, %v1038_v51, 0.0 }
 0x17e   : > { %v1096_v44 = vsel %vm1095_vm10, %v1093_v42, %v1041_v0  ;;  %v1097_v3 = vsel %vm1095_vm10, %v1094_v49, %v1042_v22  ;;  %1190 = vmatpush.msra.mxu2 %v708_v45  ;;  %vm1077_vm13 = vcmp.ge.s32.totalorder %v2101_v20, 7  ;;  %1219 = vmatpush.msra.mxu3 %v709_v54  ;;  %vm1098_vm14 = vcmask 1046528  }
 0x17f   : > { %v1065_v2 = vrot.slane %v1064_v55, 1  ;;  %v1072_v7 = vrot.slane %v1071_v56, 1  ;;  %v1134_v29 = vshrl.u32 %v774_v28, 7  ;;  %vm1234_vm15 = vcmask 64512  }
 0x180   : > { %1191 = vmatpush.msra.mxu2 %v706_v26  ;;  %1220 = vmatpush.msra.mxu3 %v707_v6  ;;  %vm2296_vm0 = vcmp.lt.s32.totalorder %v774_v28, 256 }
 0x181   : > { %v1066_v4 = vadd.f32 %v1065_v2, %v1064_v55  ;;  %v1073_v43 = vadd.f32 %v1072_v7, %v1071_v56  ;;  %1741 = vmatmul.msk.f32.vlgmr.msra.gmra.mxu2 %vm1163_vm11, %v1159_v8  ;;  %1745 = vmatmul.msk.f32.vlgmr.msra.gmra.mxu3 %vm1163_vm11, %v1159_v8  ;;  %v1135_v27 = vcvt.s32.f32 %v1134_v29 }
 0x183   : > { %v1074_v10 = vmul.f32 0.0625, %v1066_v4  ;;  %v1075_v39 = vmul.f32 0.0625, %v1073_v43  ;;  %v1136_v33 = vmul.f32 4.0, %v1135_v27  ;;  %v1155_v4 = vld [vmem:[%s2352_s4] sm:$0xff] }
 0x185   : > { %v1078_v40 = vsel %vm1076_vm12, %v1074_v10, 0.0  ;;  %v1079_v11 = vsel %vm1077_vm13, %v1075_v39, 0.0 }
 0x186   : > { %v2260_v12 = vsel %vm1098_vm14, %v1096_v44, %v1078_v40  ;;  %v2262_v19 = vsel %vm1098_vm14, %v1097_v3, %v1079_v11 }
 0x187   : > { %v1101_v20 = vrot.slane %v2260_v12, 4  ;;  %1404 = vst [vmem:[%s526_s14] sm:$0xff] %v2260_v12  ;;  %v1107_v13 = vrot.slane %v2262_v19, 4 }
 0x188   : > { %1405 = vst [vmem:[%s526_s14 + $0x8] sm:$0xff] %v2262_v19 }
 0x189   : > { %v1102_v14 = vmax.f32 %v2260_v12, %v1101_v20  ;;  %v1108_v15 = vmax.f32 %v2262_v19, %v1107_v13  ;;  %1742 = vmatmul.msk.f32.gmra.mxu2 %vm1163_vm11, %v1160_v5  ;;  %1746 = vmatmul.msk.f32.gmra.mxu3 %vm1163_vm11, %v1160_v5  ;;  %v1158_v20 = vld [vmem:[%s2352_s4 + $0x18] sm:$0xff] }
 0x18b   : > { %v1103_v16 = vrot.slane %v1102_v14, 2  ;;  %v1109_v9 = vrot.slane %v1108_v15, 2 }
 0x18d   : > { %v1104_v17 = vmax.f32 %v1102_v14, %v1103_v16  ;;  %v1110_v18 = vmax.f32 %v1108_v15, %v1109_v9 }
 0x18f   : > { %v1105_v23 = vrot.slane %v1104_v17, 1  ;;  %v1111_v24 = vrot.slane %v1110_v18, 1 }
 0x191   : > { %v1106_v60 = vmax.f32 %v1104_v17, %v1105_v23  ;;  %v1112_v61 = vmax.f32 %v1110_v18, %v1111_v24  ;;  %1743 = vmatmul.msk.f32.gmra.mxu2 %vm1163_vm11, %v1161_v35  ;;  %1747 = vmatmul.msk.f32.gmra.mxu3 %vm1163_vm11, %v1161_v35  ;;  %v1312_v18 = vpop.permute.xlu0 %1311 }
 0x193   : > { %v1113_v31 = vsub.f32 %v2260_v12, %v1106_v60  ;;  %v1114_v48 = vsub.f32 %v2262_v19, %v1112_v61  ;;  %v1317_v60 = vpop.permute.xlu1 %1316 }
 0x195   : > { %v1115_v32 = vmul.f32 1.442695, %v1113_v31  ;;  %v1117_v53 = vmul.f32 1.442695, %v1114_v48  ;;  %v1322_v48 = vpop.permute.xlu2 %1321 }
 0x197   : > { %1816 = vpow2.f32 %v1115_v32 }
 0x198   : > { %1818 = vpow2.f32 %v1117_v53 }
 0x199   : > { %1744 = vmatmul.msk.f32.gmra.mxu2 %vm1163_vm11, %v1162_v57  ;;  %1748 = vmatmul.msk.f32.gmra.mxu3 %vm1163_vm11, %v1162_v57  ;;  %v1327_v5 = vpop.permute.xlu0 %1326 }
 0x19d   : > { %v1817_v34 = vpop.eup %1816 }
 0x19e   : > { %v1819_v36 = vpop.eup %1818  ;;  %v1119_v37 = vrot.slane %v1817_v34, 4  ;;  %v1137_v41 = vmul.f32 %v1817_v34, %v1136_v33 }
 0x19f   : > { %v1125_v42 = vrot.slane %v1819_v36, 4  ;;  %v1138_v62 = vmul.f32 %v1819_v36, %v1136_v33 }
 0x1a0   : > { %v1120_v63 = vadd.f32 %v1817_v34, %v1119_v37  ;;  %v1139_v30 = vrot.slane %v1137_v41, 4 }
 0x1a1   : > { %v1126_v38 = vadd.f32 %v1819_v36, %v1125_v42  ;;  %v1145_v46 = vrot.slane %v1138_v62, 4 }
 0x1a2   : > { %v1121_v47 = vrot.slane %v1120_v63, 2  ;;  %v1140_v49 = vadd.f32 %v1139_v30, %v1137_v41 }
 0x1a3   : > { %v1127_v50 = vrot.slane %v1126_v38, 2  ;;  %v1146_v51 = vadd.f32 %v1145_v46, %v1138_v62 }
 0x1a4   : > { %v1122_v52 = vadd.f32 %v1121_v47, %v1120_v63  ;;  %v1141_v21 = vrot.slane %v1140_v49, 2  ;;  %v1352_v63 = vpop.permute.xlu1 %1351 }
 0x1a5   : > { %v1128_v55 = vadd.f32 %v1127_v50, %v1126_v38  ;;  %v1147_v56 = vrot.slane %v1146_v51, 2 }
 0x1a6   : > { %v1123_v58 = vrot.slane %v1122_v52, 1  ;;  %v1142_v2 = vadd.f32 %v1141_v21, %v1140_v49 }
 0x1a7   : > { %v1129_v1 = vrot.slane %v1128_v55, 1  ;;  %v1148_v0 = vadd.f32 %v1147_v56, %v1146_v51 }
 0x1a8   : > { %v1124_v59 = vadd.f32 %v1123_v58, %v1122_v52  ;;  %v1143_v25 = vrot.slane %v1142_v2, 1 }
 0x1a9   : > { %v1130_v22 = vadd.f32 %v1129_v1, %v1128_v55  ;;  %v1149_v7 = vrot.slane %v1148_v0, 1  ;;  %v1357_v55 = vpop.permute.xlu2 %1356 }
 0x1aa   : > { %1820 = vrcp.f32 %v1124_v59  ;;  %v1144_v54 = vadd.f32 %v1143_v25, %v1142_v2 }
 0x1ab   : > { %1822 = vrcp.f32 %v1130_v22  ;;  %v1150_v45 = vadd.f32 %v1149_v7, %v1148_v0  ;;  %v1362_v0 = vpop.permute.xlu0 %1361 }
 0x1b0   : > { %v1821_v44 = vpop.eup %1820 }
 0x1b1   : > { %v1823_v26 = vpop.eup %1822  ;;  %v1153_v3 = vmul.f32 %v1821_v44, %v2260_v12  ;;  %v1151_v39 = vmul.f32 %v1821_v44, %v1144_v54  ;;  %v1156_v12 = vld [vmem:[%s2352_s4 + $0x8] sm:$0xff] }
 0x1b2   : > { %v1152_v6 = vmul.f32 %v1823_v26, %v1150_v45  ;;  %v1154_v8 = vmul.f32 %v1823_v26, %v2262_v19  ;;  %v1408_v10 = vrot.slane %v1823_v26, 7  ;;  %v1157_v19 = vld [vmem:[%s2352_s4 + $0x10] sm:$0xff] }
 0x1b3   : > { %1262 = vmatpush.msrb.mxu0 %v1153_v3 }
 0x1b4   : > { %1291 = vmatpush.msrb.mxu1 %v1154_v8  ;;  %1749 = vmatmul.msk.f32.vlgmr.msrb.gmra.mxu0 %vm1234_vm15, %v1155_v4  ;;  %v1409_v28 = vsel %vm1080_vm9, %v1821_v44, %v1408_v10  ;;  %v1418_v40 = vrot.slane %v1152_v6, 7  ;;  %v1367_v6 = vpop.permute.xlu1 %1366 }
 0x1b5   : > { %1753 = vmatmul.msk.f32.vlgmr.msrb.gmra.mxu1 %vm1234_vm15, %v1155_v4  ;;  %1415 = vst.msk [vmem:[%s535_s28] sm:$0x3] %vm2296_vm0, %v1409_v28 }
 0x1b6   : > { %v1419_v11 = vsel %vm1080_vm9, %v1151_v39, %v1418_v40 }
 0x1b7   : > { %1421 = vst.msk [vmem:[%s544_s13] sm:$0x3] %vm2296_vm0, %v1419_v11 }
 0x1bc   : > { %1750 = vmatmul.msk.f32.gmra.mxu0 %vm1234_vm15, %v1156_v12 }
 0x1bd   : > { %1754 = vmatmul.msk.f32.gmra.mxu1 %vm1234_vm15, %v1156_v12 }
 0x1c4   : > { %1751 = vmatmul.msk.f32.gmra.mxu0 %vm1234_vm15, %v1157_v19 }
 0x1c5   : > { %1755 = vmatmul.msk.f32.gmra.mxu1 %vm1234_vm15, %v1157_v19 }
 0x1cc   : > { %1752 = vmatmul.msk.f32.gmra.mxu0 %vm1234_vm15, %v1158_v20 }
 0x1cd   : > { %1756 = vmatmul.msk.f32.gmra.mxu1 %vm1234_vm15, %v1158_v20 }
 0x204   : > { %v1193_v13 = vpop.f32.mrf.mxu2  ;;  %v1222_v14 = vpop.f32.mrf.mxu3 }
 0x20c   : > { %v1196_v9 = vpop.f32.mrf.mxu2  ;;  %v1225_v17 = vpop.f32.mrf.mxu3 }
 0x214   : > { %v1199_v61 = vpop.f32.mrf.mxu2  ;;  %v1228_v31 = vpop.f32.mrf.mxu3 }
 0x21c   : > { %v1202_v49 = vpop.f32.mrf.mxu2  ;;  %v1231_v52 = vpop.f32.mrf.mxu3 }
 0x231   : > { %v1264_v15 = vpop.f32.mrf.mxu0 }
 0x232   : > { %v1293_v16 = vpop.f32.mrf.mxu1  ;;  %v1265_v53 = vadd.f32 %v1264_v15, %v1193_v13 }
 0x233   : > { %v1294_v27 = vadd.f32 %v1293_v16, %v1222_v14 }
 0x234   : > { %v1329_v42 = vadd.f32 %v1312_v18, %v1265_v53 }
 0x235   : > { %v1330_v30 = vadd.f32 %v1312_v18, %v1294_v27 }
 0x236   : > { %v1337_v50 = vmax.f32 %v1329_v42, 0.0 }
 0x237   : > { %v1338_v56 = vmax.f32 %v1330_v30, 0.0 }
 0x238   : > { %v1369_v7 = vmul.f32 %v1352_v63, %v1337_v50 }
 0x239   : > { %v1267_v23 = vpop.f32.mrf.mxu0  ;;  %v1370_v45 = vmul.f32 %v1352_v63, %v1338_v56 }
 0x23a   : > { %v1296_v24 = vpop.f32.mrf.mxu1  ;;  %v1268_v29 = vadd.f32 %v1267_v23, %v1196_v9  ;;  %v1399_v23 = vpop.permute.xlu2 %1398 }
 0x23b   : > { %v1297_v32 = vadd.f32 %v1296_v24, %v1225_v17 }
 0x23c   : > { %v1331_v34 = vadd.f32 %v1317_v60, %v1268_v29 }
 0x23d   : > { %v1332_v37 = vadd.f32 %v1317_v60, %v1297_v32 }
 0x23e   : > { %v1339_v46 = vmax.f32 %v1331_v34, 0.0 }
 0x23f   : > { %v1340_v47 = vmax.f32 %v1332_v37, 0.0 }
 0x240   : > { %v1371_v21 = vmul.f32 %v1357_v55, %v1339_v46 }
 0x241   : > { %v1270_v33 = vpop.f32.mrf.mxu0  ;;  %v1372_v22 = vmul.f32 %v1357_v55, %v1340_v47 }
 0x242   : > { %v1271_v35 = vadd.f32 %v1270_v33, %v1199_v61  ;;  %v1299_v36 = vpop.f32.mrf.mxu1  ;;  %v1377_v4 = vadd.f32 %v1371_v21, %v1369_v7  ;;  %v1401_v61 = vperm.slane %v1399_v23, 0 }
 0x243   : > { %v1300_v41 = vadd.f32 %v1299_v36, %v1228_v31  ;;  %v1386_v8 = vadd.f32 %v1372_v22, %v1370_v45 }
 0x244   : > { %v1333_v62 = vadd.f32 %v1322_v48, %v1271_v35 }
 0x245   : > { %v1334_v38 = vadd.f32 %v1322_v48, %v1300_v41 }
 0x246   : > { %v1341_v51 = vmax.f32 %v1333_v62, 0.0 }
 0x247   : > { %v1342_v57 = vmax.f32 %v1334_v38, 0.0 }
 0x248   : > { %v1373_v25 = vmul.f32 %v1362_v0, %v1341_v51 }
 0x249   : > { %v1273_v58 = vpop.f32.mrf.mxu0  ;;  %v1374_v26 = vmul.f32 %v1362_v0, %v1342_v57 }
 0x24a   : > { %v1274_v1 = vadd.f32 %v1273_v58, %v1202_v49  ;;  %v1302_v59 = vpop.f32.mrf.mxu1  ;;  %v1378_v39 = vadd.f32 %v1377_v4, %v1373_v25 }
 0x24b   : > { %v1303_v2 = vadd.f32 %v1302_v59, %v1231_v52  ;;  %v1387_v40 = vadd.f32 %v1386_v8, %v1374_v26 }
 0x24c   : > { %v1335_v44 = vadd.f32 %v1327_v5, %v1274_v1 }
 0x24d   : > { %v1336_v3 = vadd.f32 %v1327_v5, %v1303_v2 }
 0x24e   : > { %v1343_v54 = vmax.f32 %v1335_v44, 0.0 }
 0x24f   : > { %v1344_v10 = vmax.f32 %v1336_v3, 0.0 }
 0x250   : > { %v1375_v28 = vmul.f32 %v1367_v6, %v1343_v54 }
 0x251   : > { %v1376_v11 = vmul.f32 %v1367_v6, %v1344_v10 }
 0x252   : > { %v1379_v12 = vadd.f32 %v1378_v39, %v1375_v28 }
 0x253   : > { %v1388_v19 = vadd.f32 %v1387_v40, %v1376_v11 }
 0x254   : > { %v1380_v20 = vrot.slane %v1379_v12, 4 }
 0x255   : > { %v1389_v13 = vrot.slane %v1388_v19, 4 }
 0x256   : > { %v1381_v14 = vadd.f32 %v1380_v20, %v1379_v12 }
 0x257   : > { %v1390_v15 = vadd.f32 %v1389_v13, %v1388_v19 }
 0x258   : > { %v1382_v16 = vrot.slane %v1381_v14, 2 }
 0x259   : > { %v1391_v9 = vrot.slane %v1390_v15, 2 }
 0x25a   : > { %v1383_v17 = vadd.f32 %v1382_v16, %v1381_v14 }
 0x25b   : > { %v1392_v18 = vadd.f32 %v1391_v9, %v1390_v15 }
 0x25c   : > { %v1384_v24 = vrot.slane %v1383_v17, 1 }
 0x25d   : > { %v1393_v60 = vrot.slane %v1392_v18, 1 }
 0x25e   : > { %v1385_v29 = vadd.f32 %v1384_v24, %v1383_v17 }
 0x25f   : > { %v1394_v31 = vadd.f32 %v1393_v60, %v1392_v18 }
 0x260   : > { %v1402_v32 = vadd.f32 %v1401_v61, %v1385_v29 }
 0x261   : > { %v1403_v48 = vadd.f32 %v1401_v61, %v1394_v31 }
 0x263   : > { %v1424_v53 = vrot.slane %v1403_v48, 7 }
 0x265   : > { %v1425_v5 = vsel %vm1080_vm9, %v1402_v32, %v1424_v53 }
 0x266   : > { %1427 = vst.msk [vmem:[%s553_s26] sm:$0x3] %vm2296_vm0, %v1425_v5 }
 0x267 PF: > { %s25_s25 = sadd.s32 1, %s1846_s25   ;;  %s2363_s23 = smov %s1842_s24 }
 0x268   : > { %p22_p5 = scmp.ge.s32.totalorder %s25_s25, 4   ;;  %s2364_s24 = smov %s2366_s8 }
 0x26a   :  { %24 = sbr.rel (!%p22_p5) target bundleno = 3 (0x3), region = 125 }

</bundles_post_ra>
